<compile_context>
chip_gen: v7x
topology: tpu7x:2x2x1
jax: 0.10.0
libtpu: 0.0.40
codegen_flags: <defaults>
</compile_context>

<pallas_src>
import math
from typing import NamedTuple

import jax
import jax.numpy as jnp
from jax import lax
from jax.experimental import pallas as pl
from jax.experimental.pallas import tpu as pltpu


# ----------------------------- configuration ------------------------------
HIDDEN = 128                      # demo-sized hidden_nerf (module default 1024); kernels are generic in H
POS_MIN_DEG, POS_MAX_DEG = 0, 7   # 3 dims * 7 degs * {sin,cos} = 42  ("21 * 2")
VIEW_MIN_DEG, VIEW_MAX_DEG = 0, 4 # 2 dims * 4 degs * {sin,cos} = 16
INPUT_SIZE = 21 * 2 + (VIEW_MAX_DEG - VIEW_MIN_DEG) * 2 * 2   # = 58
DENSITY_BIAS = -1.0
RGB_PADDING = 0.001
RESAMPLE_PADDING = 0.01
WHITE_BKGD = False

VMEM_LIMIT_BYTES = 32 * 1024 * 1024   # fits the default scoped VMEM on v5e/v6e/v7x


class Rays(NamedTuple):
    origins: jnp.ndarray      # (R, 3)
    directions: jnp.ndarray   # (R, 3)
    viewdirs: jnp.ndarray     # (R, 2)
    radii: jnp.ndarray        # (R, 1)
    near: jnp.ndarray         # (R, 1)
    far: jnp.ndarray          # (R, 1)


def _round_up(x, m):
    return ((x + m - 1) // m) * m


# ------------------------ plain-JAX glue (mip-NeRF) ------------------------
def expected_sin(x, x_var):
    return jnp.exp(-0.5 * x_var) * jnp.sin(x)


def integrated_pos_enc(mean, cov_diag, min_deg, max_deg):
    """Integrated positional encoding of a diagonal Gaussian. (..., 3)->(..., 42)."""
    scales = 2.0 ** jnp.arange(min_deg, max_deg, dtype=jnp.float32)       # (L,)
    out_shape = mean.shape[:-1] + (mean.shape[-1] * scales.shape[0],)
    y = (mean[..., None, :] * scales[:, None]).reshape(out_shape)
    y_var = (cov_diag[..., None, :] * (scales[:, None] ** 2)).reshape(out_shape)
    return expected_sin(jnp.concatenate([y, y + 0.5 * jnp.pi], axis=-1),
                        jnp.concatenate([y_var, y_var], axis=-1))


def pos_enc(x, min_deg, max_deg):
    """Plain positional encoding (no identity). (..., D)->(..., D*(max-min)*2)."""
    scales = 2.0 ** jnp.arange(min_deg, max_deg, dtype=jnp.float32)
    xb = (x[..., None, :] * scales[:, None]).reshape(
        x.shape[:-1] + (x.shape[-1] * scales.shape[0],))
    return jnp.sin(jnp.concatenate([xb, xb + 0.5 * jnp.pi], axis=-1))


def sorted_piecewise_constant_pdf(bins, weights, num_samples, randomized):
    # TODO(synk): randomized=True branch (jittered u) omitted; module default is False.
    del randomized
    eps = 1e-5
    weight_sum = jnp.sum(weights, axis=-1, keepdims=True)
    padding = jnp.maximum(0.0, eps - weight_sum)
    weights = weights + padding / weights.shape[-1]
    weight_sum = weight_sum + padding
    pdf = weights / weight_sum
    cdf = jnp.minimum(1.0, jnp.cumsum(pdf[..., :-1], axis=-1))
    cdf = jnp.concatenate(
        [jnp.zeros_like(cdf[..., :1]), cdf, jnp.ones_like(cdf[..., :1])], axis=-1)

    u = jnp.linspace(0.0, 1.0 - eps, num_samples, dtype=jnp.float32)
    u = jnp.broadcast_to(u, bins.shape[:-1] + (num_samples,))

    mask = u[..., None, :] >= cdf[..., :, None]

    def find_interval(x):
        x0 = jnp.max(jnp.where(mask, x[..., None], x[..., :1, None]), axis=-2)
        x1 = jnp.min(jnp.where(~mask, x[..., None], x[..., -1:, None]), axis=-2)
        return x0, x1

    bins_g0, bins_g1 = find_interval(bins)
    cdf_g0, cdf_g1 = find_interval(cdf)
    t = jnp.clip(jnp.nan_to_num((u - cdf_g0) / (cdf_g1 - cdf_g0), nan=0.0), 0.0, 1.0)
    return bins_g0 + t * (bins_g1 - bins_g0)


def lift_gaussian(d, t_mean, t_var, r_var):
    mean = d[..., None, :] * t_mean[..., None]
    d_mag_sq = jnp.maximum(1e-10, jnp.sum(d ** 2, axis=-1, keepdims=True))
    d_outer_diag = d ** 2
    null_outer_diag = 1.0 - d_outer_diag / d_mag_sq
    t_cov_diag = t_var[..., None] * d_outer_diag[..., None, :]
    xy_cov_diag = r_var[..., None] * null_outer_diag[..., None, :]
    return mean, t_cov_diag + xy_cov_diag


def conical_frustum_to_gaussian(d, t0, t1, base_radius):
    mu = (t0 + t1) / 2.0
    hw = (t1 - t0) / 2.0
    common = 3.0 * mu ** 2 + hw ** 2
    t_mean = mu + (2.0 * mu * hw ** 2) / common
    t_var = hw ** 2 / 3.0 - (4.0 / 15.0) * ((hw ** 4 * (12.0 * mu ** 2 - hw ** 2)) / common ** 2)
    r_var = base_radius ** 2 * (mu ** 2 / 4.0 + (5.0 / 12.0) * hw ** 2
                                - (4.0 / 15.0) * (hw ** 4) / common)
    return lift_gaussian(d, t_mean, t_var, r_var)


def cast_rays(t_vals, origins, directions, radii):
    t0 = t_vals[..., :-1]
    t1 = t_vals[..., 1:]
    means, covs = conical_frustum_to_gaussian(directions, t0, t1, radii)
    means = means + origins[..., None, :]
    return means, covs


def resample_along_rays(origins, directions, radii, t_vals, weights,
                        randomized, resample_padding):
    # blurpool of the coarse weights, then inverse-CDF resampling.
    weights_pad = jnp.concatenate([weights[..., :1], weights, weights[..., -1:]], axis=-1)
    weights_max = jnp.maximum(weights_pad[..., :-1], weights_pad[..., 1:])
    weights_blur = 0.5 * (weights_max[..., :-1] + weights_max[..., 1:])
    weights = weights_blur + resample_padding
    new_t_vals = sorted_piecewise_constant_pdf(t_vals, weights, t_vals.shape[-1], randomized)
    means, covs = cast_rays(new_t_vals, origins, directions, radii)
    return new_t_vals, (means, covs)


def t_to_s(t_vals, near, far):
    return (t_vals - near) / (far - near)


# ------------------------------ Pallas kernels ------------------------------
def nerf_mlp_pallas(x, params, *, tm=4096):
    """Fused 8-layer MLP + fused density/color head + activations.

    x: (M, 58) bf16 (or f32)  ->  rgbd (M, 4) bf16;
    cols 0:3 = padded rgb, col 3 = softplus(sigmoid(.) + density_bias), exactly
    as in the PyTorch module (final_density = Linear -> Sigmoid, then Softplus).
    """
    M, IN = x.shape
    w0, b0, wh, bh, wd, bd, wc, bc = params
    H = w0.shape[1]
    NL = wh.shape[0]   # 7 hidden (H,H) layers

    # bf16 weights / activations, f32 MXU accumulation; biases and epilogue in f32.
    w0 = w0.astype(jnp.bfloat16)
    wh = wh.astype(jnp.bfloat16)
    wo = jnp.concatenate([wc, wd], axis=1).astype(jnp.bfloat16)   # (H, 4): rgb | density
    bo = jnp.concatenate([bc, bd], axis=1).astype(jnp.float32)    # (1, 4)
    b0 = b0.astype(jnp.float32)
    bh = bh.astype(jnp.float32)
    if x.dtype != jnp.bfloat16:
        x = x.astype(jnp.bfloat16)

    # Row tile: multiple of 16 (bf16 sublane packing).  Guarantee >= 2 grid steps
    # whenever there is enough work so the v7x megacore can shard the "parallel"
    # axis across both TensorCores; pad rows only if the grid isn't exact.
    M16 = _round_up(M, 16)
    TM = min(tm, M16)
    if M16 >= 32 and M16 <= TM:
        TM = _round_up(M16 // 2, 16)
    M_pad = _round_up(M, TM)
    if M_pad != M:
        x = jnp.pad(x, ((0, M_pad - M), (0, 0)))

    def kernel(x_ref, w0_ref, b0_ref, wh_ref, bh_ref, wo_ref, bo_ref, out_ref):
        def sigmoid(v):                        # EUP-only form (tanh), no f32 divide
            return 0.5 * jnp.tanh(0.5 * v) + 0.5

        h = jnp.dot(x_ref[...], w0_ref[...],
                    preferred_element_type=jnp.float32) + b0_ref[...]
        h = jnp.maximum(h, 0.0)                # ReLU
        for i in range(NL - 1):                # 6 hidden ReLU layers
            h = jnp.dot(h.astype(jnp.bfloat16), wh_ref[i],
                        preferred_element_type=jnp.float32) + bh_ref[i]
            h = jnp.maximum(h, 0.0)
        h = jnp.dot(h.astype(jnp.bfloat16), wh_ref[NL - 1],
                    preferred_element_type=jnp.float32) + bh_ref[NL - 1]
        h = sigmoid(h)                         # final Sequential layer: Sigmoid

        # Fused heads: one (TM, 4) matmul, cols 0:3 = raw_rgb, col 3 = raw_density.
        raw = sigmoid(jnp.dot(h.astype(jnp.bfloat16), wo_ref[...],
                              preferred_element_type=jnp.float32) + bo_ref[...])
        lane = lax.broadcasted_iota(jnp.int32, raw.shape, 1)
        rgb_branch = raw * (1.0 + 2.0 * RGB_PADDING) - RGB_PADDING
        # Softplus(raw_density + density_bias); the sigmoid head (as in the PyTorch
        # module) bounds the argument to (-1, 0), so the naive form is stable.
        dens_branch = jnp.log(1.0 + jnp.exp(raw + DENSITY_BIAS))
        out_ref[...] = jnp.where(lane < 3, rgb_branch, dens_branch).astype(out_ref.dtype)

    def const(shape):
        nd = len(shape)
        return pl.BlockSpec(shape, lambda i, _nd=nd: (0,) * _nd)

    rgbd = pl.pallas_call(
        kernel,
        out_shape=jax.ShapeDtypeStruct((M_pad, 4), jnp.bfloat16),
        grid=(M_pad // TM,),
        in_specs=[
            pl.BlockSpec((TM, IN), lambda i: (i, 0)),
            const((IN, H)), const((1, H)),
            const((NL, H, H)), const((NL, 1, H)),
            const((H, 4)), const((1, 4)),
        ],
        out_specs=pl.BlockSpec((TM, 4), lambda i: (i, 0)),
        compiler_params=pltpu.CompilerParams(
            dimension_semantics=("parallel",),
            vmem_limit_bytes=VMEM_LIMIT_BYTES),
    )(x, w0, b0, wh, bh, wo, bo)
    return rgbd[:M]


def volumetric_rendering_pallas(rgbd, t_vals, dirs, white_bkgd=False, *, tr=512):
    """rgbd (R,S,4) [rgb|density] (bf16), t_vals (R,S+1) f32, dirs (R,3) f32.

    Returns comp_rgb (R,3), distance (R,), acc (R,), weights (R,S)  (all f32).
    """
    R, S, _ = rgbd.shape

    # One XLA transpose pass to channel-major (4, R, S) bf16 replaces the four
    # strided channel slices (each was a full read + rewrite of the buffer).
    rgbd_cm = jnp.moveaxis(rgbd.astype(jnp.bfloat16), -1, 0)                # (4,R,S)

    # Plain-XLA prep so the kernel only sees lane-dense (·, S) planes
    # (no unaligned (S+1) slicing inside the kernel); planes travel as bf16.
    t0 = t_vals[:, :-1]
    t1 = t_vals[:, 1:]
    t_mids = (0.5 * (t0 + t1)).astype(jnp.bfloat16)
    delta = ((t1 - t0) * jnp.sqrt(jnp.sum(dirs * dirs, axis=-1, keepdims=True))
             ).astype(jnp.bfloat16)
    t_bounds = jnp.concatenate([t_vals[:, :1], t_vals[:, -1:]], axis=-1)     # (R,2) f32

    # Strict upper-triangular ones matrix (bf16: exact 0/1) for the exclusive-
    # cumsum-as-matmul; resident in VMEM via a constant index_map.
    tri = (jnp.arange(S)[:, None] < jnp.arange(S)[None, :]).astype(jnp.bfloat16)

    TR = min(tr, _round_up(R, 8))
    if _round_up(R, 8) >= 16 and _round_up(R, 8) <= TR:
        TR = _round_up(_round_up(R, 8) // 2, 8)     # >= 2 tiles for v7x megacore
    R_pad = _round_up(R, TR)
    if R_pad != R:
        rgbd_cm = jnp.pad(rgbd_cm, ((0, 0), (0, R_pad - R), (0, 0)))
        t_mids = jnp.pad(t_mids, ((0, R_pad - R), (0, 0)))
        delta = jnp.pad(delta, ((0, R_pad - R), (0, 0)))
        t_bounds = jnp.pad(t_bounds, ((0, R_pad - R), (0, 0)))

    def kernel(rgbd_ref, tmid_ref, delta_ref, tb_ref, tri_ref, pack_ref, w_ref):
        dens = rgbd_ref[3].astype(jnp.float32)                               # (TR,S)
        dd = dens * delta_ref[...].astype(jnp.float32)
        alpha = 1.0 - jnp.exp(-dd)
        # Exclusive cumsum over samples as two NATIVE-bf16 MXU matmuls against the
        # strict upper-triangular ones matrix; the hi/lo split of dd keeps ~f32
        # accuracy while avoiding f32-matmul emulation (important on v5e).
        dd_hi = dd.astype(jnp.bfloat16)
        dd_lo = (dd - dd_hi.astype(jnp.float32)).astype(jnp.bfloat16)
        exc = (jnp.dot(dd_hi, tri_ref[...], preferred_element_type=jnp.float32)
               + jnp.dot(dd_lo, tri_ref[...], preferred_element_type=jnp.float32))
        weights = alpha * jnp.exp(-exc)
        w_ref[...] = weights

        acc = jnp.sum(weights, axis=-1, keepdims=True)                       # (TR,1)
        dist_num = jnp.sum(weights * tmid_ref[...].astype(jnp.float32),
                           axis=-1, keepdims=True)
        inv_acc = pl.reciprocal(acc, approx=True)                            # EUP slot
        dist = jnp.where(acc > 0.0, dist_num * inv_acc, jnp.inf)             # nan -> inf
        dist = jnp.maximum(jnp.minimum(dist, tb_ref[:, 1:2]), tb_ref[:, 0:1])

        comp_r = jnp.sum(weights * rgbd_ref[0].astype(jnp.float32), axis=-1, keepdims=True)
        comp_g = jnp.sum(weights * rgbd_ref[1].astype(jnp.float32), axis=-1, keepdims=True)
        comp_b = jnp.sum(weights * rgbd_ref[2].astype(jnp.float32), axis=-1, keepdims=True)
        comp_rgb = jnp.concatenate([comp_r, comp_g, comp_b], axis=-1)        # (TR,3)
        if white_bkgd:
            comp_rgb = comp_rgb + (1.0 - acc)

        # Pack comp_rgb | dist | acc | zero-pad into one (TR, 8) store stream.
        pack_ref[...] = jnp.concatenate(
            [comp_rgb, dist, acc, jnp.zeros_like(comp_rgb)], axis=-1)

    plane = pl.BlockSpec((TR, S), lambda r: (r, 0))
    packed, weights = pl.pallas_call(
        kernel,
        out_shape=(jax.ShapeDtypeStruct((R_pad, 8), jnp.float32),
                   jax.ShapeDtypeStruct((R_pad, S), jnp.float32)),
        grid=(R_pad // TR,),
        in_specs=[
            pl.BlockSpec((4, TR, S), lambda r: (0, r, 0)),    # rgbd, channel-major
            plane,                                            # t_mids
            plane,                                            # delta
            pl.BlockSpec((TR, 2), lambda r: (r, 0)),          # t_bounds
            pl.BlockSpec((S, S), lambda r: (0, 0)),           # tri (resident)
        ],
        out_specs=(pl.BlockSpec((TR, 8), lambda r: (r, 0)),
                   pl.BlockSpec((TR, S), lambda r: (r, 0))),
        compiler_params=pltpu.CompilerParams(
            dimension_semantics=("parallel",),
            vmem_limit_bytes=VMEM_LIMIT_BYTES),
    )(rgbd_cm, t_mids, delta, t_bounds, tri)

    comp_rgb = packed[:R, 0:3]
    distance = packed[:R, 3]
    acc = packed[:R, 4]
    return comp_rgb, distance, acc, weights[:R]


# ----------------------------- parameter init ------------------------------
def init_params(key):
    H = HIDDEN

    def kaiming(k, fan_in, fan_out):
        # nn.init.kaiming_uniform_ defaults: gain=sqrt(2), bound=gain*sqrt(3/fan_in)
        bound = math.sqrt(2.0) * math.sqrt(3.0 / fan_in)
        return jax.random.uniform(k, (fan_in, fan_out), jnp.float32, -bound, bound)

    def bias(k, fan_in, fan_out):
        bound = 1.0 / math.sqrt(fan_in)
        return jax.random.uniform(k, (fan_out,), jnp.float32, -bound, bound)

    keys = list(jax.random.split(key, 20))
    ki = iter(keys)
    w0 = kaiming(next(ki), INPUT_SIZE, H)
    b0 = bias(next(ki), INPUT_SIZE, H)[None, :]
    wh_list, bh_list = [], []
    for _ in range(7):
        wh_list.append(kaiming(next(ki), H, H))
        bh_list.append(bias(next(ki), H, H)[None, :])
    wh = jnp.stack(wh_list)          # (7, H, H)
    bh = jnp.stack(bh_list)          # (7, 1, H)
    wd = kaiming(next(ki), H, 1)
    bd = bias(next(ki), H, 1)[None, :]
    wc = kaiming(next(ki), H, 3)
    bc = bias(next(ki), H, 3)[None, :]
    return (w0, b0, wh, bh, wd, bd, wc, bc)


# -------------------------------- forward ----------------------------------
def nerf_net_forward(params, rays, t_vals, coarse_weights):
    t_vals, (mean, cov) = resample_along_rays(
        origins=rays.origins, directions=rays.directions, radii=rays.radii,
        t_vals=t_vals, weights=coarse_weights,
        randomized=False, resample_padding=RESAMPLE_PADDING)

    # Stage MLP inputs in bf16 so the (R*S, 58) array is written once in bf16
    # (no f32 materialization + second cast pass).  The viewdirs broadcast is a
    # fusible producer of the concat, not a separately stored (R,S,16) f32 array.
    samples_enc = integrated_pos_enc(mean, cov, POS_MIN_DEG, POS_MAX_DEG
                                     ).astype(jnp.bfloat16)                 # (R,S,42)
    viewdirs_enc = pos_enc(rays.viewdirs, VIEW_MIN_DEG, VIEW_MAX_DEG
                           ).astype(jnp.bfloat16)                           # (R,16)
    R, S = samples_enc.shape[0], samples_enc.shape[1]
    viewdirs_b = jnp.broadcast_to(viewdirs_enc[:, None, :],
                                  (R, S, viewdirs_enc.shape[-1]))
    input_enc = jnp.concatenate([samples_enc, viewdirs_b], axis=-1)         # (R,S,58) bf16

    x = input_enc.reshape(R * S, INPUT_SIZE)
    rgbd_flat = nerf_mlp_pallas(x, params)                                  # (R*S, 4) bf16
    rgbd = rgbd_flat.reshape(R, S, 4)

    comp_rgb, distance, acc, weights = volumetric_rendering_pallas(
        rgbd, t_vals, rays.directions, WHITE_BKGD)

    s_vals = t_to_s(t_vals, rays.near, rays.far)
    return comp_rgb, distance, acc, t_vals, weights, s_vals


# ---------------------------------- main ------------------------------------
if __name__ == "__main__":
    key = jax.random.PRNGKey(0)
    kp, ko, kd, kv, kw = jax.random.split(key, 5)

    R = 8   # rays
    SC = 8  # coarse samples  ->  t_vals has SC + 1 bin edges, SC fine samples

    params = init_params(kp)

    origins = jax.random.normal(ko, (R, 3), jnp.float32)
    directions = jax.random.normal(kd, (R, 3), jnp.float32)
    viewdirs = jax.random.normal(kv, (R, 2), jnp.float32)   # 2-D viewdirs -> 16 enc feats
    radii = jnp.full((R, 1), 0.01, jnp.float32)
    near = jnp.full((R, 1), 2.0, jnp.float32)
    far = jnp.full((R, 1), 6.0, jnp.float32)
    rays = Rays(origins, directions, viewdirs, radii, near, far)

    t_vals = jnp.broadcast_to(jnp.linspace(2.0, 6.0, SC + 1, dtype=jnp.float32),
                              (R, SC + 1))
    coarse_weights = jax.random.uniform(kw, (R, SC), jnp.float32)

    fwd = jax.jit(nerf_net_forward)
    outs = fwd(params, rays, t_vals, coarse_weights)
    outs = jax.block_until_ready(outs)
    comp_rgb, distance, acc, t_vals_out, fine_weights, s_vals = outs

    assert comp_rgb.shape == (R, 3)
    assert distance.shape == (R,)
    assert acc.shape == (R,)
    assert t_vals_out.shape == (R, SC + 1)
    assert fine_weights.shape == (R, SC)
    assert s_vals.shape == (R, SC + 1)
    assert bool(jnp.all(jnp.isfinite(comp_rgb)))
    assert bool(jnp.all(jnp.isfinite(distance)))
    assert bool(jnp.all(jnp.isfinite(fine_weights)))
    # loose physical sanity: weights >= 0, opacity <= 1, rgb within padded range
    assert bool(jnp.all(fine_weights >= -1e-5))
    assert bool(jnp.all((acc >= -1e-3) & (acc <= 1.01)))
    assert bool(jnp.all((comp_rgb >= -0.02) & (comp_rgb <= 1.02)))

    print("KERNEL_OK")
</pallas_src>

<mosaic_0001>
module attributes {stable_mosaic.version = 11 : i64} {
  func.func @kernel(%arg0: i32, %arg1: memref<32x58xbf16, #tpu.memory_space<vmem>>, %arg2: memref<58x128xbf16, #tpu.memory_space<vmem>>, %arg3: memref<1x128xf32, #tpu.memory_space<vmem>>, %arg4: memref<7x128x128xbf16, #tpu.memory_space<vmem>>, %arg5: memref<7x1x128xf32, #tpu.memory_space<vmem>>, %arg6: memref<128x4xbf16, #tpu.memory_space<vmem>>, %arg7: memref<1x4xf32, #tpu.memory_space<vmem>>, %arg8: memref<32x4xbf16, #tpu.memory_space<vmem>>) attributes {dimension_semantics = [#tpu.dimension_semantics<parallel>], iteration_bounds = array<i64: 2>, scalar_prefetch = 0 : i64, scratch_operands = 0 : i64, tpu.core_type = #tpu.core_type<tc>, window_params = [{transform_indices = @transform_0, window_bounds = array<i64: 32, 58>}, {pipeline_mode = #tpu.pipeline_mode<synchronous>, transform_indices = @transform_1, window_bounds = array<i64: 58, 128>}, {pipeline_mode = #tpu.pipeline_mode<synchronous>, transform_indices = @transform_2, window_bounds = array<i64: 1, 128>}, {pipeline_mode = #tpu.pipeline_mode<synchronous>, transform_indices = @transform_3, window_bounds = array<i64: 7, 128, 128>}, {pipeline_mode = #tpu.pipeline_mode<synchronous>, transform_indices = @transform_4, window_bounds = array<i64: 7, 1, 128>}, {pipeline_mode = #tpu.pipeline_mode<synchronous>, transform_indices = @transform_5, window_bounds = array<i64: 128, 4>}, {pipeline_mode = #tpu.pipeline_mode<synchronous>, transform_indices = @transform_6, window_bounds = array<i64: 1, 4>}, {transform_indices = @transform_7, window_bounds = array<i64: 32, 4>}]} {
    %c0 = arith.constant 0 : index
    %c0_0 = arith.constant 0 : index
    %0 = vector.load %arg1[%c0, %c0_0] : memref<32x58xbf16, #tpu.memory_space<vmem>>, vector<32x58xbf16>
    %c0_1 = arith.constant 0 : index
    %c0_2 = arith.constant 0 : index
    %1 = vector.load %arg2[%c0_1, %c0_2] : memref<58x128xbf16, #tpu.memory_space<vmem>>, vector<58x128xbf16>
    %cst = arith.constant dense<0.000000e+00> : vector<32x128xf32>
    %2 = tpu.matmul %0, %1, %cst {dimension_numbers = #tpu.dot_dimension_numbers<[1], [0], [0], [1], [0, 0, 1, 1], [], []>} : vector<32x58xbf16>, vector<58x128xbf16>, vector<32x128xf32> -> vector<32x128xf32>
    %c0_3 = arith.constant 0 : index
    %c0_4 = arith.constant 0 : index
    %3 = vector.load %arg3[%c0_3, %c0_4] : memref<1x128xf32, #tpu.memory_space<vmem>>, vector<1x128xf32>
    %4 = vector.broadcast %3 : vector<1x128xf32> to vector<32x128xf32>
    %5 = arith.addf %2, %4 : vector<32x128xf32>
    %cst_5 = arith.constant 0.000000e+00 : f32
    %6 = vector.broadcast %cst_5 : f32 to vector<32x128xf32>
    %7 = arith.maximumf %5, %6 : vector<32x128xf32>
    %8 = arith.truncf %7 : vector<32x128xf32> to vector<32x128xbf16>
    %c0_6 = arith.constant 0 : index
    %c0_7 = arith.constant 0 : index
    %c0_8 = arith.constant 0 : index
    %9 = vector.load %arg4[%c0_6, %c0_7, %c0_8] : memref<7x128x128xbf16, #tpu.memory_space<vmem>>, vector<1x128x128xbf16>
    %10 = vector.shape_cast %9 : vector<1x128x128xbf16> to vector<128x128xbf16>
    %cst_9 = arith.constant dense<0.000000e+00> : vector<32x128xf32>
    %11 = tpu.matmul %8, %10, %cst_9 {dimension_numbers = #tpu.dot_dimension_numbers<[1], [0], [0], [1], [0, 0, 1, 1], [], []>} : vector<32x128xbf16>, vector<128x128xbf16>, vector<32x128xf32> -> vector<32x128xf32>
    %c0_10 = arith.constant 0 : index
    %c0_11 = arith.constant 0 : index
    %c0_12 = arith.constant 0 : index
    %12 = vector.load %arg5[%c0_10, %c0_11, %c0_12] : memref<7x1x128xf32, #tpu.memory_space<vmem>>, vector<1x1x128xf32>
    %13 = vector.shape_cast %12 : vector<1x1x128xf32> to vector<1x128xf32>
    %14 = vector.broadcast %13 : vector<1x128xf32> to vector<32x128xf32>
    %15 = arith.addf %11, %14 : vector<32x128xf32>
    %cst_13 = arith.constant 0.000000e+00 : f32
    %16 = vector.broadcast %cst_13 : f32 to vector<32x128xf32>
    %17 = arith.maximumf %15, %16 : vector<32x128xf32>
    %18 = arith.truncf %17 : vector<32x128xf32> to vector<32x128xbf16>
    %c1 = arith.constant 1 : index
    %c0_14 = arith.constant 0 : index
    %c0_15 = arith.constant 0 : index
    %19 = vector.load %arg4[%c1, %c0_14, %c0_15] : memref<7x128x128xbf16, #tpu.memory_space<vmem>>, vector<1x128x128xbf16>
    %20 = vector.shape_cast %19 : vector<1x128x128xbf16> to vector<128x128xbf16>
    %cst_16 = arith.constant dense<0.000000e+00> : vector<32x128xf32>
    %21 = tpu.matmul %18, %20, %cst_16 {dimension_numbers = #tpu.dot_dimension_numbers<[1], [0], [0], [1], [0, 0, 1, 1], [], []>} : vector<32x128xbf16>, vector<128x128xbf16>, vector<32x128xf32> -> vector<32x128xf32>
    %c1_17 = arith.constant 1 : index
    %c0_18 = arith.constant 0 : index
    %c0_19 = arith.constant 0 : index
    %22 = vector.load %arg5[%c1_17, %c0_18, %c0_19] : memref<7x1x128xf32, #tpu.memory_space<vmem>>, vector<1x1x128xf32>
    %23 = vector.shape_cast %22 : vector<1x1x128xf32> to vector<1x128xf32>
    %24 = vector.broadcast %23 : vector<1x128xf32> to vector<32x128xf32>
    %25 = arith.addf %21, %24 : vector<32x128xf32>
    %cst_20 = arith.constant 0.000000e+00 : f32
    %26 = vector.broadcast %cst_20 : f32 to vector<32x128xf32>
    %27 = arith.maximumf %25, %26 : vector<32x128xf32>
    %28 = arith.truncf %27 : vector<32x128xf32> to vector<32x128xbf16>
    %c2 = arith.constant 2 : index
    %c0_21 = arith.constant 0 : index
    %c0_22 = arith.constant 0 : index
    %29 = vector.load %arg4[%c2, %c0_21, %c0_22] : memref<7x128x128xbf16, #tpu.memory_space<vmem>>, vector<1x128x128xbf16>
    %30 = vector.shape_cast %29 : vector<1x128x128xbf16> to vector<128x128xbf16>
    %cst_23 = arith.constant dense<0.000000e+00> : vector<32x128xf32>
    %31 = tpu.matmul %28, %30, %cst_23 {dimension_numbers = #tpu.dot_dimension_numbers<[1], [0], [0], [1], [0, 0, 1, 1], [], []>} : vector<32x128xbf16>, vector<128x128xbf16>, vector<32x128xf32> -> vector<32x128xf32>
    %c2_24 = arith.constant 2 : index
    %c0_25 = arith.constant 0 : index
    %c0_26 = arith.constant 0 : index
    %32 = vector.load %arg5[%c2_24, %c0_25, %c0_26] : memref<7x1x128xf32, #tpu.memory_space<vmem>>, vector<1x1x128xf32>
    %33 = vector.shape_cast %32 : vector<1x1x128xf32> to vector<1x128xf32>
    %34 = vector.broadcast %33 : vector<1x128xf32> to vector<32x128xf32>
    %35 = arith.addf %31, %34 : vector<32x128xf32>
    %cst_27 = arith.constant 0.000000e+00 : f32
    %36 = vector.broadcast %cst_27 : f32 to vector<32x128xf32>
    %37 = arith.maximumf %35, %36 : vector<32x128xf32>
    %38 = arith.truncf %37 : vector<32x128xf32> to vector<32x128xbf16>
    %c3 = arith.constant 3 : index
    %c0_28 = arith.constant 0 : index
    %c0_29 = arith.constant 0 : index
    %39 = vector.load %arg4[%c3, %c0_28, %c0_29] : memref<7x128x128xbf16, #tpu.memory_space<vmem>>, vector<1x128x128xbf16>
    %40 = vector.shape_cast %39 : vector<1x128x128xbf16> to vector<128x128xbf16>
    %cst_30 = arith.constant dense<0.000000e+00> : vector<32x128xf32>
    %41 = tpu.matmul %38, %40, %cst_30 {dimension_numbers = #tpu.dot_dimension_numbers<[1], [0], [0], [1], [0, 0, 1, 1], [], []>} : vector<32x128xbf16>, vector<128x128xbf16>, vector<32x128xf32> -> vector<32x128xf32>
    %c3_31 = arith.constant 3 : index
    %c0_32 = arith.constant 0 : index
    %c0_33 = arith.constant 0 : index
    %42 = vector.load %arg5[%c3_31, %c0_32, %c0_33] : memref<7x1x128xf32, #tpu.memory_space<vmem>>, vector<1x1x128xf32>
    %43 = vector.shape_cast %42 : vector<1x1x128xf32> to vector<1x128xf32>
    %44 = vector.broadcast %43 : vector<1x128xf32> to vector<32x128xf32>
    %45 = arith.addf %41, %44 : vector<32x128xf32>
    %cst_34 = arith.constant 0.000000e+00 : f32
    %46 = vector.broadcast %cst_34 : f32 to vector<32x128xf32>
    %47 = arith.maximumf %45, %46 : vector<32x128xf32>
    %48 = arith.truncf %47 : vector<32x128xf32> to vector<32x128xbf16>
    %c4 = arith.constant 4 : index
    %c0_35 = arith.constant 0 : index
    %c0_36 = arith.constant 0 : index
    %49 = vector.load %arg4[%c4, %c0_35, %c0_36] : memref<7x128x128xbf16, #tpu.memory_space<vmem>>, vector<1x128x128xbf16>
    %50 = vector.shape_cast %49 : vector<1x128x128xbf16> to vector<128x128xbf16>
    %cst_37 = arith.constant dense<0.000000e+00> : vector<32x128xf32>
    %51 = tpu.matmul %48, %50, %cst_37 {dimension_numbers = #tpu.dot_dimension_numbers<[1], [0], [0], [1], [0, 0, 1, 1], [], []>} : vector<32x128xbf16>, vector<128x128xbf16>, vector<32x128xf32> -> vector<32x128xf32>
    %c4_38 = arith.constant 4 : index
    %c0_39 = arith.constant 0 : index
    %c0_40 = arith.constant 0 : index
    %52 = vector.load %arg5[%c4_38, %c0_39, %c0_40] : memref<7x1x128xf32, #tpu.memory_space<vmem>>, vector<1x1x128xf32>
    %53 = vector.shape_cast %52 : vector<1x1x128xf32> to vector<1x128xf32>
    %54 = vector.broadcast %53 : vector<1x128xf32> to vector<32x128xf32>
    %55 = arith.addf %51, %54 : vector<32x128xf32>
    %cst_41 = arith.constant 0.000000e+00 : f32
    %56 = vector.broadcast %cst_41 : f32 to vector<32x128xf32>
    %57 = arith.maximumf %55, %56 : vector<32x128xf32>
    %58 = arith.truncf %57 : vector<32x128xf32> to vector<32x128xbf16>
    %c5 = arith.constant 5 : index
    %c0_42 = arith.constant 0 : index
    %c0_43 = arith.constant 0 : index
    %59 = vector.load %arg4[%c5, %c0_42, %c0_43] : memref<7x128x128xbf16, #tpu.memory_space<vmem>>, vector<1x128x128xbf16>
    %60 = vector.shape_cast %59 : vector<1x128x128xbf16> to vector<128x128xbf16>
    %cst_44 = arith.constant dense<0.000000e+00> : vector<32x128xf32>
    %61 = tpu.matmul %58, %60, %cst_44 {dimension_numbers = #tpu.dot_dimension_numbers<[1], [0], [0], [1], [0, 0, 1, 1], [], []>} : vector<32x128xbf16>, vector<128x128xbf16>, vector<32x128xf32> -> vector<32x128xf32>
    %c5_45 = arith.constant 5 : index
    %c0_46 = arith.constant 0 : index
    %c0_47 = arith.constant 0 : index
    %62 = vector.load %arg5[%c5_45, %c0_46, %c0_47] : memref<7x1x128xf32, #tpu.memory_space<vmem>>, vector<1x1x128xf32>
    %63 = vector.shape_cast %62 : vector<1x1x128xf32> to vector<1x128xf32>
    %64 = vector.broadcast %63 : vector<1x128xf32> to vector<32x128xf32>
    %65 = arith.addf %61, %64 : vector<32x128xf32>
    %cst_48 = arith.constant 0.000000e+00 : f32
    %66 = vector.broadcast %cst_48 : f32 to vector<32x128xf32>
    %67 = arith.maximumf %65, %66 : vector<32x128xf32>
    %68 = arith.truncf %67 : vector<32x128xf32> to vector<32x128xbf16>
    %c6 = arith.constant 6 : index
    %c0_49 = arith.constant 0 : index
    %c0_50 = arith.constant 0 : index
    %69 = vector.load %arg4[%c6, %c0_49, %c0_50] : memref<7x128x128xbf16, #tpu.memory_space<vmem>>, vector<1x128x128xbf16>
    %70 = vector.shape_cast %69 : vector<1x128x128xbf16> to vector<128x128xbf16>
    %cst_51 = arith.constant dense<0.000000e+00> : vector<32x128xf32>
    %71 = tpu.matmul %68, %70, %cst_51 {dimension_numbers = #tpu.dot_dimension_numbers<[1], [0], [0], [1], [0, 0, 1, 1], [], []>} : vector<32x128xbf16>, vector<128x128xbf16>, vector<32x128xf32> -> vector<32x128xf32>
    %c6_52 = arith.constant 6 : index
    %c0_53 = arith.constant 0 : index
    %c0_54 = arith.constant 0 : index
    %72 = vector.load %arg5[%c6_52, %c0_53, %c0_54] : memref<7x1x128xf32, #tpu.memory_space<vmem>>, vector<1x1x128xf32>
    %73 = vector.shape_cast %72 : vector<1x1x128xf32> to vector<1x128xf32>
    %74 = vector.broadcast %73 : vector<1x128xf32> to vector<32x128xf32>
    %75 = arith.addf %71, %74 : vector<32x128xf32>
    %cst_55 = arith.constant 5.000000e-01 : f32
    %76 = vector.broadcast %cst_55 : f32 to vector<32x128xf32>
    %77 = arith.mulf %76, %75 : vector<32x128xf32>
    %78 = math.tanh %77 : vector<32x128xf32>
    %cst_56 = arith.constant 5.000000e-01 : f32
    %79 = vector.broadcast %cst_56 : f32 to vector<32x128xf32>
    %80 = arith.mulf %79, %78 : vector<32x128xf32>
    %cst_57 = arith.constant 5.000000e-01 : f32
    %81 = vector.broadcast %cst_57 : f32 to vector<32x128xf32>
    %82 = arith.addf %80, %81 : vector<32x128xf32>
    %83 = arith.truncf %82 : vector<32x128xf32> to vector<32x128xbf16>
    %c0_58 = arith.constant 0 : index
    %c0_59 = arith.constant 0 : index
    %84 = vector.load %arg6[%c0_58, %c0_59] : memref<128x4xbf16, #tpu.memory_space<vmem>>, vector<128x4xbf16>
    %cst_60 = arith.constant dense<0.000000e+00> : vector<32x4xf32>
    %85 = tpu.matmul %83, %84, %cst_60 {dimension_numbers = #tpu.dot_dimension_numbers<[1], [0], [0], [1], [0, 0, 1, 1], [], []>} : vector<32x128xbf16>, vector<128x4xbf16>, vector<32x4xf32> -> vector<32x4xf32>
    %c0_61 = arith.constant 0 : index
    %c0_62 = arith.constant 0 : index
    %86 = vector.load %arg7[%c0_61, %c0_62] : memref<1x4xf32, #tpu.memory_space<vmem>>, vector<1x4xf32>
    %87 = vector.broadcast %86 : vector<1x4xf32> to vector<32x4xf32>
    %88 = arith.addf %85, %87 : vector<32x4xf32>
    %cst_63 = arith.constant 5.000000e-01 : f32
    %89 = vector.broadcast %cst_63 : f32 to vector<32x4xf32>
    %90 = arith.mulf %89, %88 : vector<32x4xf32>
    %91 = math.tanh %90 : vector<32x4xf32>
    %cst_64 = arith.constant 5.000000e-01 : f32
    %92 = vector.broadcast %cst_64 : f32 to vector<32x4xf32>
    %93 = arith.mulf %92, %91 : vector<32x4xf32>
    %cst_65 = arith.constant 5.000000e-01 : f32
    %94 = vector.broadcast %cst_65 : f32 to vector<32x4xf32>
    %95 = arith.addf %93, %94 : vector<32x4xf32>
    %96 = tpu.iota {dimensions = array<i32: 1>} : vector<32x4xi32>
    %cst_66 = arith.constant 1.002000e+00 : f32
    %97 = vector.broadcast %cst_66 : f32 to vector<32x4xf32>
    %98 = arith.mulf %95, %97 : vector<32x4xf32>
    %cst_67 = arith.constant 1.000000e-03 : f32
    %99 = vector.broadcast %cst_67 : f32 to vector<32x4xf32>
    %100 = arith.subf %98, %99 : vector<32x4xf32>
    %cst_68 = arith.constant -1.000000e+00 : f32
    %101 = vector.broadcast %cst_68 : f32 to vector<32x4xf32>
    %102 = arith.addf %95, %101 : vector<32x4xf32>
    %103 = math.exp %102 : vector<32x4xf32>
    %cst_69 = arith.constant 1.000000e+00 : f32
    %104 = vector.broadcast %cst_69 : f32 to vector<32x4xf32>
    %105 = arith.addf %104, %103 : vector<32x4xf32>
    %106 = math.log %105 : vector<32x4xf32>
    %c3_i32 = arith.constant 3 : i32
    %107 = vector.broadcast %c3_i32 : i32 to vector<32x4xi32>
    %108 = arith.cmpi slt, %96, %107 : vector<32x4xi32>
    %109 = arith.select %108, %100, %106 : vector<32x4xi1>, vector<32x4xf32>
    %110 = arith.truncf %109 : vector<32x4xf32> to vector<32x4xbf16>
    %c0_70 = arith.constant 0 : index
    %c0_71 = arith.constant 0 : index
    %111 = vector.load %arg8[%c0_70, %c0_71] : memref<32x4xbf16, #tpu.memory_space<vmem>>, vector<32x4xbf16>
    tpu.vector_store %arg8[%c0_70, %c0_71], %110 {strides = array<i32>} : memref<32x4xbf16, #tpu.memory_space<vmem>>, vector<32x4xbf16>,
    return
  }
  func.func @transform_0(%arg0: i32) -> (i32, i32) {
    %c0_i32 = arith.constant 0 : i32
    %c0_i32_0 = arith.constant 0 : i32
    return %arg0, %c0_i32 : i32, i32
  }
  func.func @transform_1(%arg0: i32) -> (i32, i32) {
    %c0_i32 = arith.constant 0 : i32
    %c0_i32_0 = arith.constant 0 : i32
    %c0_i32_1 = arith.constant 0 : i32
    return %c0_i32, %c0_i32_0 : i32, i32
  }
  func.func @transform_2(%arg0: i32) -> (i32, i32) {
    %c0_i32 = arith.constant 0 : i32
    %c0_i32_0 = arith.constant 0 : i32
    %c0_i32_1 = arith.constant 0 : i32
    return %c0_i32, %c0_i32_0 : i32, i32
  }
  func.func @transform_3(%arg0: i32) -> (i32, i32, i32) {
    %c0_i32 = arith.constant 0 : i32
    %c0_i32_0 = arith.constant 0 : i32
    %c0_i32_1 = arith.constant 0 : i32
    %c0_i32_2 = arith.constant 0 : i32
    return %c0_i32, %c0_i32_0, %c0_i32_1 : i32, i32, i32
  }
  func.func @transform_4(%arg0: i32) -> (i32, i32, i32) {
    %c0_i32 = arith.constant 0 : i32
    %c0_i32_0 = arith.constant 0 : i32
    %c0_i32_1 = arith.constant 0 : i32
    %c0_i32_2 = arith.constant 0 : i32
    return %c0_i32, %c0_i32_0, %c0_i32_1 : i32, i32, i32
  }
  func.func @transform_5(%arg0: i32) -> (i32, i32) {
    %c0_i32 = arith.constant 0 : i32
    %c0_i32_0 = arith.constant 0 : i32
    %c0_i32_1 = arith.constant 0 : i32
    return %c0_i32, %c0_i32_0 : i32, i32
  }
  func.func @transform_6(%arg0: i32) -> (i32, i32) {
    %c0_i32 = arith.constant 0 : i32
    %c0_i32_0 = arith.constant 0 : i32
    %c0_i32_1 = arith.constant 0 : i32
    return %c0_i32, %c0_i32_0 : i32, i32
  }
  func.func @transform_7(%arg0: i32) -> (i32, i32) {
    %c0_i32 = arith.constant 0 : i32
    %c0_i32_0 = arith.constant 0 : i32
    return %arg0, %c0_i32 : i32, i32
  }
}

module attributes {stable_mosaic.version = 11 : i64} {
  func.func @kernel(%arg0: i32, %arg1: memref<4x8x8xbf16, #tpu.memory_space<vmem>>, %arg2: memref<8x8xbf16, #tpu.memory_space<vmem>>, %arg3: memref<8x8xbf16, #tpu.memory_space<vmem>>, %arg4: memref<8x2xf32, #tpu.memory_space<vmem>>, %arg5: memref<8x8xbf16, #tpu.memory_space<vmem>>, %arg6: memref<8x8xf32, #tpu.memory_space<vmem>>, %arg7: memref<8x8xf32, #tpu.memory_space<vmem>>) attributes {dimension_semantics = [#tpu.dimension_semantics<parallel>], iteration_bounds = array<i64: 1>, scalar_prefetch = 0 : i64, scratch_operands = 0 : i64, tpu.core_type = #tpu.core_type<tc>, window_params = [{transform_indices = @transform_0, window_bounds = array<i64: 4, 8, 8>}, {transform_indices = @transform_1, window_bounds = array<i64: 8, 8>}, {transform_indices = @transform_2, window_bounds = array<i64: 8, 8>}, {transform_indices = @transform_3, window_bounds = array<i64: 8, 2>}, {pipeline_mode = #tpu.pipeline_mode<synchronous>, transform_indices = @transform_4, window_bounds = array<i64: 8, 8>}, {transform_indices = @transform_5, window_bounds = array<i64: 8, 8>}, {transform_indices = @transform_6, window_bounds = array<i64: 8, 8>}]} {
    %c3 = arith.constant 3 : index
    %c0 = arith.constant 0 : index
    %c0_0 = arith.constant 0 : index
    %0 = vector.load %arg1[%c3, %c0, %c0_0] : memref<4x8x8xbf16, #tpu.memory_space<vmem>>, vector<1x8x8xbf16>
    %1 = vector.shape_cast %0 : vector<1x8x8xbf16> to vector<8x8xbf16>
    %2 = arith.extf %1 : vector<8x8xbf16> to vector<8x8xf32>
    %c0_1 = arith.constant 0 : index
    %c0_2 = arith.constant 0 : index
    %3 = vector.load %arg3[%c0_1, %c0_2] : memref<8x8xbf16, #tpu.memory_space<vmem>>, vector<8x8xbf16>
    %4 = arith.extf %3 : vector<8x8xbf16> to vector<8x8xf32>
    %5 = arith.mulf %2, %4 : vector<8x8xf32>
    %cst = arith.constant 0.000000e+00 : f32
    %6 = vector.broadcast %cst : f32 to vector<8x8xf32>
    %7 = arith.subf %6, %5 : vector<8x8xf32>
    %8 = math.exp %7 : vector<8x8xf32>
    %cst_3 = arith.constant 1.000000e+00 : f32
    %9 = vector.broadcast %cst_3 : f32 to vector<8x8xf32>
    %10 = arith.subf %9, %8 : vector<8x8xf32>
    %11 = arith.truncf %5 : vector<8x8xf32> to vector<8x8xbf16>
    %12 = arith.extf %11 : vector<8x8xbf16> to vector<8x8xf32>
    %13 = arith.subf %5, %12 : vector<8x8xf32>
    %14 = arith.truncf %13 : vector<8x8xf32> to vector<8x8xbf16>
    %c0_4 = arith.constant 0 : index
    %c0_5 = arith.constant 0 : index
    %15 = vector.load %arg5[%c0_4, %c0_5] : memref<8x8xbf16, #tpu.memory_space<vmem>>, vector<8x8xbf16>
    %cst_6 = arith.constant dense<0.000000e+00> : vector<8x8xf32>
    %16 = tpu.matmul %11, %15, %cst_6 {dimension_numbers = #tpu.dot_dimension_numbers<[1], [0], [0], [1], [0, 0, 1, 1], [], []>} : vector<8x8xbf16>, vector<8x8xbf16>, vector<8x8xf32> -> vector<8x8xf32>
    %c0_7 = arith.constant 0 : index
    %c0_8 = arith.constant 0 : index
    %17 = vector.load %arg5[%c0_7, %c0_8] : memref<8x8xbf16, #tpu.memory_space<vmem>>, vector<8x8xbf16>
    %cst_9 = arith.constant dense<0.000000e+00> : vector<8x8xf32>
    %18 = tpu.matmul %14, %17, %cst_9 {dimension_numbers = #tpu.dot_dimension_numbers<[1], [0], [0], [1], [0, 0, 1, 1], [], []>} : vector<8x8xbf16>, vector<8x8xbf16>, vector<8x8xf32> -> vector<8x8xf32>
    %19 = arith.addf %16, %18 : vector<8x8xf32>
    %cst_10 = arith.constant 0.000000e+00 : f32
    %20 = vector.broadcast %cst_10 : f32 to vector<8x8xf32>
    %21 = arith.subf %20, %19 : vector<8x8xf32>
    %22 = math.exp %21 : vector<8x8xf32>
    %23 = arith.mulf %10, %22 : vector<8x8xf32>
    %c0_11 = arith.constant 0 : index
    %c0_12 = arith.constant 0 : index
    %24 = vector.load %arg7[%c0_11, %c0_12] : memref<8x8xf32, #tpu.memory_space<vmem>>, vector<8x8xf32>
    tpu.vector_store %arg7[%c0_11, %c0_12], %23 {strides = array<i32>} : memref<8x8xf32, #tpu.memory_space<vmem>>, vector<8x8xf32>,
    %cst_13 = arith.constant dense<0.000000e+00> : vector<8xf32>
    %25 = vector.multi_reduction <add>, %23, %cst_13 [1] : vector<8x8xf32> to vector<8xf32>
    %26 = vector.shape_cast %25 : vector<8xf32> to vector<8x1xf32>
    %c0_14 = arith.constant 0 : index
    %c0_15 = arith.constant 0 : index
    %27 = vector.load %arg2[%c0_14, %c0_15] : memref<8x8xbf16, #tpu.memory_space<vmem>>, vector<8x8xbf16>
    %28 = arith.extf %27 : vector<8x8xbf16> to vector<8x8xf32>
    %29 = arith.mulf %23, %28 : vector<8x8xf32>
    %cst_16 = arith.constant dense<0.000000e+00> : vector<8xf32>
    %30 = vector.multi_reduction <add>, %29, %cst_16 [1] : vector<8x8xf32> to vector<8xf32>
    %31 = vector.shape_cast %30 : vector<8xf32> to vector<8x1xf32>
    %32 = tpu.reciprocal %26 {approx = true} : vector<8x1xf32> -> vector<8x1xf32>
    %cst_17 = arith.constant 0.000000e+00 : f32
    %33 = vector.broadcast %cst_17 : f32 to vector<8x1xf32>
    %34 = arith.cmpf ogt, %26, %33 : vector<8x1xf32>
    %35 = arith.mulf %31, %32 : vector<8x1xf32>
    %cst_18 = arith.constant 0x7F800000 : f32
    %36 = vector.broadcast %cst_18 : f32 to vector<8x1xf32>
    %37 = arith.select %34, %35, %36 : vector<8x1xi1>, vector<8x1xf32>
    %c0_19 = arith.constant 0 : index
    %c1 = arith.constant 1 : index
    %38 = vector.load %arg4[%c0_19, %c1] : memref<8x2xf32, #tpu.memory_space<vmem>>, vector<8x1xf32>
    %39 = arith.minimumf %37, %38 : vector<8x1xf32>
    %c0_20 = arith.constant 0 : index
    %c0_21 = arith.constant 0 : index
    %40 = vector.load %arg4[%c0_20, %c0_21] : memref<8x2xf32, #tpu.memory_space<vmem>>, vector<8x1xf32>
    %41 = arith.maximumf %39, %40 : vector<8x1xf32>
    %c0_22 = arith.constant 0 : index
    %c0_23 = arith.constant 0 : index
    %c0_24 = arith.constant 0 : index
    %42 = vector.load %arg1[%c0_22, %c0_23, %c0_24] : memref<4x8x8xbf16, #tpu.memory_space<vmem>>, vector<1x8x8xbf16>
    %43 = vector.shape_cast %42 : vector<1x8x8xbf16> to vector<8x8xbf16>
    %44 = arith.extf %43 : vector<8x8xbf16> to vector<8x8xf32>
    %45 = arith.mulf %23, %44 : vector<8x8xf32>
    %cst_25 = arith.constant dense<0.000000e+00> : vector<8xf32>
    %46 = vector.multi_reduction <add>, %45, %cst_25 [1] : vector<8x8xf32> to vector<8xf32>
    %47 = vector.shape_cast %46 : vector<8xf32> to vector<8x1xf32>
    %c1_26 = arith.constant 1 : index
    %c0_27 = arith.constant 0 : index
    %c0_28 = arith.constant 0 : index
    %48 = vector.load %arg1[%c1_26, %c0_27, %c0_28] : memref<4x8x8xbf16, #tpu.memory_space<vmem>>, vector<1x8x8xbf16>
    %49 = vector.shape_cast %48 : vector<1x8x8xbf16> to vector<8x8xbf16>
    %50 = arith.extf %49 : vector<8x8xbf16> to vector<8x8xf32>
    %51 = arith.mulf %23, %50 : vector<8x8xf32>
    %cst_29 = arith.constant dense<0.000000e+00> : vector<8xf32>
    %52 = vector.multi_reduction <add>, %51, %cst_29 [1] : vector<8x8xf32> to vector<8xf32>
    %53 = vector.shape_cast %52 : vector<8xf32> to vector<8x1xf32>
    %c2 = arith.constant 2 : index
    %c0_30 = arith.constant 0 : index
    %c0_31 = arith.constant 0 : index
    %54 = vector.load %arg1[%c2, %c0_30, %c0_31] : memref<4x8x8xbf16, #tpu.memory_space<vmem>>, vector<1x8x8xbf16>
    %55 = vector.shape_cast %54 : vector<1x8x8xbf16> to vector<8x8xbf16>
    %56 = arith.extf %55 : vector<8x8xbf16> to vector<8x8xf32>
    %57 = arith.mulf %23, %56 : vector<8x8xf32>
    %cst_32 = arith.constant dense<0.000000e+00> : vector<8xf32>
    %58 = vector.multi_reduction <add>, %57, %cst_32 [1] : vector<8x8xf32> to vector<8xf32>
    %59 = vector.shape_cast %58 : vector<8xf32> to vector<8x1xf32>
    %60 = tpu.concatenate %47, %53, %59 in 1 : vector<8x1xf32>, vector<8x1xf32>, vector<8x1xf32> -> vector<8x3xf32>
    %cst_33 = arith.constant 0.000000e+00 : f32
    %61 = vector.broadcast %cst_33 : f32 to vector<8x3xf32>
    %62 = tpu.concatenate %60, %41, %26, %61 in 1 : vector<8x3xf32>, vector<8x1xf32>, vector<8x1xf32>, vector<8x3xf32> -> vector<8x8xf32>
    %c0_34 = arith.constant 0 : index
    %c0_35 = arith.constant 0 : index
    %63 = vector.load %arg6[%c0_34, %c0_35] : memref<8x8xf32, #tpu.memory_space<vmem>>, vector<8x8xf32>
    tpu.vector_store %arg6[%c0_34, %c0_35], %62 {strides = array<i32>} : memref<8x8xf32, #tpu.memory_space<vmem>>, vector<8x8xf32>,
    return
  }
  func.func @transform_0(%arg0: i32) -> (i32, i32, i32) {
    %c0_i32 = arith.constant 0 : i32
    %c0_i32_0 = arith.constant 0 : i32
    %c0_i32_1 = arith.constant 0 : i32
    return %c0_i32, %arg0, %c0_i32_0 : i32, i32, i32
  }
  func.func @transform_1(%arg0: i32) -> (i32, i32) {
    %c0_i32 = arith.constant 0 : i32
    %c0_i32_0 = arith.constant 0 : i32
    return %arg0, %c0_i32 : i32, i32
  }
  func.func @transform_2(%arg0: i32) -> (i32, i32) {
    %c0_i32 = arith.constant 0 : i32
    %c0_i32_0 = arith.constant 0 : i32
    return %arg0, %c0_i32 : i32, i32
  }
  func.func @transform_3(%arg0: i32) -> (i32, i32) {
    %c0_i32 = arith.constant 0 : i32
    %c0_i32_0 = arith.constant 0 : i32
    return %arg0, %c0_i32 : i32, i32
  }
  func.func @transform_4(%arg0: i32) -> (i32, i32) {
    %c0_i32 = arith.constant 0 : i32
    %c0_i32_0 = arith.constant 0 : i32
    %c0_i32_1 = arith.constant 0 : i32
    return %c0_i32, %c0_i32_0 : i32, i32
  }
  func.func @transform_5(%arg0: i32) -> (i32, i32) {
    %c0_i32 = arith.constant 0 : i32
    %c0_i32_0 = arith.constant 0 : i32
    return %arg0, %c0_i32 : i32, i32
  }
  func.func @transform_6(%arg0: i32) -> (i32, i32) {
    %c0_i32 = arith.constant 0 : i32
    %c0_i32_0 = arith.constant 0 : i32
    return %arg0, %c0_i32 : i32, i32
  }
}

</mosaic_0001>

<bundles_post_ra>
// kernel: nerf_net_forward.3
= control target key start
LH: loop header
LB: loop body
LE: loop exit
PB: predicated region body
PF: predicated region fallthrough
CT: control target
= control target key end

     0   :  { %vm43_vm0 = vcmask 1043456   ;;  %v265_v2 = vmov 0.0   ;;  %vm266_vm1 = vmmov 0   ;;  %s351_s0 = inlined_call_operand.vmem [shape: bf16[4,8,8], index: 0, kind: input, shape index: {}]   ;;  %s352_s1 = inlined_call_operand.vmem [shape: bf16[8,8], index: 1, kind: input, shape index: {}]   ;;  %s353_s2 = inlined_call_operand.vmem [shape: bf16[8,8], index: 2, kind: input, shape index: {}]   ;;  %s354_s3 = inlined_call_operand.vmem [shape: f32[8,2], index: 3, kind: input, shape index: {}]   ;;  %s355_s4 = inlined_call_operand.vmem [shape: bf16[8,8], index: 4, kind: input, shape index: {}]   ;;  %s356_s5 = inlined_call_operand.vmem [shape: f32[8,8], index: 5, kind: output, shape index: {0}]   ;;  %s357_s6 = inlined_call_operand.hbm [shape: f32[8,8], index: 6, kind: output, shape index: {1}]  }
   0x1   :  { %v38_v0 = vld [vmem:[%s355_s4] sm:$0xf]  ;;  %v208_v1 = vld [vmem:[%s351_s0 + $0x8] sm:$0xff]   ;;  %223 = vmatprep.subr.bf16.mxu0 %v265_v2  ;;  %217 = vmatprep.subr.bf16.mxu1 %v265_v2 }
   0x2   :  { %v45_v3 = vsel %vm43_vm0, %v38_v0, 0  ;;  %v26_v4 = vunpack.c.h.bf16 %v208_v1  ;;  %v27_v5 = vld [vmem:[%s353_s2] sm:$0xf]  ;;  %225 = vmatprep.mubr.msk.bf16.mxu0 %vm266_vm1, %v265_v2 }
   0x3   :  { %v317_v6 = vld [vmem:[%s354_s3] sm:$0xff]  ;;  %224 = vmatpush3.bf16.msra.mxu0 %v45_v3  ;;  %v28_v7 = vunpack.c.l.bf16 %v27_v5 }
   0x4   :  { %12 = vsyncpa [#allocation3], 0  ;;  %218 = vmatpush3.bf16.msra.mxu1 %v45_v3  ;;  %219 = vmatprep.mubr.msk.bf16.mxu1 %vm266_vm1, %v265_v2  ;;  %s267_s4 = smov 1   ;;  %vm39_vm2 = vcmask 64512   ;;  %v155_v27 = vld [vmem:[%s351_s0] sm:$0xff]   ;;  %v170_v41 = vunpack.c.l.bf16 %v208_v1  ;;  %s268_s0 = smov [#allocation2]  }
   0x5   :  { %v29_v8 = vmul.f32 %v28_v7, %v26_v4  ;;  %151 = vrot.lane.b32.xlu1 %v317_v6, %s267_s4  ;;  %v138_v28 = vld [vmem:[%s352_s1] sm:$0xf]  ;;  %v156_v30 = vunpack.c.l.bf16 %v155_v27  ;;  %v163_v37 = vunpack.c.h.bf16 %v155_v27  ;;  %s198_s1 = sshll.u32 %s268_s0, 4  ;;  %s199_s1 = int_to_ptr.vmem [resolvable:$true] %s198_s1 }
   0x6   :  { %v139_v31 = vunpack.c.l.bf16 %v138_v28  ;;  %s241_s7 = scalar_lea.vmem %s199_s1, 128  ;;  %p246_p1 = scmp.lt.s32.totalorder %s199_s1, %s199_s1 }
   0x7   :  { %v34_v9 = vpack.c.bf16 %v29_v8, %v29_v8  ;;  %v30_v13 = vsub.f32 0.0, %v29_v8  ;;  %p242_p0 = scmp.ne.s32.totalorder %s199_s1, %s241_s7  ;;  %p247_p2 = scmp.lt.s32.totalorder %s241_s7, %s241_s7 }
   0x9   :  { %v35_v10 = vunpack.c.l.bf16 %v34_v9  ;;  %226 = vmatmul.mubr.msk.bf16.vlgmr.msra.gmra.mrb[0].mxu0 %vm39_vm2, %v34_v9  ;;  %v31_v17 = vmul.f32 1.442695, %v30_v13  ;;  %p248_p3 = por %p247_p2, %p246_p1 }
   0xb   :  { %v36_v11 = vsub.f32 %v29_v8, %v35_v10  ;;  %235 = vpow2.f32 %v31_v17  ;;  %p249_p4 = pnand %p248_p3, %p242_p0 }
   0xd   :  { %v37_v12 = vpack.c.bf16 %v36_v11, %v36_v11 }
   0xf   :  { %220 = vmatmul.mubr.msk.bf16.vlgmr.msra.gmra.mrb[0].mxu1 %vm39_vm2, %v37_v12 }
  0x15   :  { %v236_v26 = vpop.eup %235 }
  0x16   :  { %v33_v29 = vsub.f32 1.0, %v236_v26 }
  0xdc   :  { %v124_v14 = vpop.f32.mrb[0].mxu0 }
  0xdd   :  { %v227_v15 = vpop.f32.mrb[1].mxu0 }
  0xde   :  { %v127_v16 = vpop.f32.mrb[2].mxu0 }
  0xdf   :  { %v228_v18 = vpop.f32.mrb[3].mxu0 }
  0xe2   :  { %v81_v19 = vpop.f32.mrb[0].mxu1 }
  0xe3   :  { %v125_v20 = vadd.f32 %v124_v14, %v81_v19  ;;  %v221_v21 = vpop.f32.mrb[1].mxu1 }
  0xe4   :  { %v84_v22 = vpop.f32.mrb[2].mxu1 }
  0xe5   :  { %v130_v23 = vsub.f32 0.0, %v125_v20  ;;  %v222_v24 = vpop.f32.mrb[3].mxu1 }
  0xe7   :  { %v131_v25 = vmul.f32 1.442695, %v130_v23 }
  0xe9   :  { %237 = vpow2.f32 %v131_v25 }
  0xf3   :  { %v238_v32 = vpop.eup %237 }
  0xf4   :  { %v133_v33 = vmul.f32 %v238_v32, %v33_v29 }
  0xf6   :  { %134 = vst.msk [vmem:[#allocation2] sm:$0xff] %vm39_vm2, %v133_v33  ;;  %v135_v34 = vsel %vm39_vm2, %v133_v33, 0.0  ;;  %v157_v35 = vmul.f32 %v156_v30, %v133_v33  ;;  %v140_v36 = vmul.f32 %v139_v31, %v133_v33  ;;  %v164_v40 = vmul.f32 %v163_v37, %v133_v33 }
  0xf7   :  { %136 = vadd.xlane.f32.xlu0 %v135_v34  ;;  %v171_v43 = vmul.f32 %v170_v41, %v133_v33 }
  0xf8   :  { %v158_v38 = vsel %vm39_vm2, %v157_v35, 0.0  ;;  %v141_v39 = vsel %vm39_vm2, %v140_v36, 0.0  ;;  %v165_v42 = vsel %vm39_vm2, %v164_v40, 0.0 }
  0xf9   :  { %159 = vadd.xlane.f32.xlu1 %v158_v38  ;;  %v172_v44 = vsel %vm39_vm2, %v171_v43, 0.0 }
  0xfb   :  { %142 = vadd.xlane.f32.xlu0 %v141_v39 }
  0xff   :  { %166 = vadd.xlane.f32.xlu0 %v165_v42 }
 0x103   :  { %173 = vadd.xlane.f32.xlu0 %v172_v44 }
 0x184   :  { %v137_v45 = vpop.xlane.xlu0 %136 }
 0x185   :  { %239 = vrcp.f32 %v137_v45 }
 0x186   :  { %252 = shalt.err (!%p249_p4)
}
 0x187   :  { %s253_s10 = scalar_lea.hbm %s357_s6, 128 }
 0x188   :  { %p254_p5 = scmp.ne.s32.totalorder %s357_s6, %s253_s10  ;;  %p257_p6 = scmp.lt.u32.totalorder %s253_s10, %s357_s6 }
 0x18a   :  { %p259_p7 = pnand %p257_p6, %p254_p5 }
 0x18c   :  { %262 = shalt.err (!%p259_p7)
}
 0x18d   :  { %201 = dma.vmem_to_hbm [thread:$0]  %s199_s1, 128, %s357_s6, [#allocation3]   ;;  %v143_v47 = vpop.xlane.xlu0 %142  ;;  %vm145_vm3 = vcmp.gt.f32.partialorder %v137_v45, 0.0  ;;  %v152_v51 = vpop.permute.xlu1 %151  ;;  %vm175_vm4 = vcmask 7168   ;;  %vm177_vm5 = vcmask 15360   ;;  %vm183_vm6 = vcmask 23552  }
 0x18e   :  { %s269_s17 = smov 2   ;;  %vm185_vm7 = vcmask 31744   ;;  %vm187_vm8 = vcmask 39936  }
 0x18f   :  { %v240_v46 = vpop.eup %239 }
 0x190   :  { %v146_v48 = vmul.f32 %v240_v46, %v143_v47 }
 0x191   :  { %v167_v53 = vpop.xlane.xlu0 %166  ;;  %v160_v55 = vpop.xlane.xlu1 %159 }
 0x192   :  { %v147_v49 = vsel %vm145_vm3, %v146_v48, inf  ;;  %v176_v56 = vsel %vm175_vm4, %v160_v55, %v167_v53 }
 0x193   :  { %v149_v50 = vmin.f32 %v147_v49, %v317_v6 }
 0x195   :  { %v154_v52 = vmax.f32 %v149_v50, %v152_v51  ;;  %v174_v54 = vpop.xlane.xlu0 %173 }
 0x196   :  { %v178_v57 = vsel %vm177_vm5, %v176_v56, %v174_v54 }
 0x197   :  { %180 = vrot.lane.b32.xlu0 %v154_v52, %s269_s17 }
 0x209   :  { %v181_v58 = vpop.permute.xlu0 %180 }
 0x20a   :  { %v184_v59 = vsel %vm183_vm6, %v178_v57, %v181_v58 }
 0x20b   :  { %v186_v60 = vsel %vm185_vm7, %v184_v59, %v137_v45 }
 0x20c   :  { %v188_v61 = vsel %vm187_vm8, %v186_v60, 0.0 }
 0x20d   :  { %189 = vst.msk [vmem:[%s356_s5] sm:$0xff] %vm39_vm2, %v188_v61 }
 0x20e   :  { %263 = dma.done.wait [#allocation3], 128  }
 0x20f   :  { %264 = vsyncadd [#allocation3], 4294967168 }
 0x210   :  { %207 = vsyncpa [#allocation3], 1 }

// kernel: nerf_net_forward.2
= control target key start
LH: loop header
LB: loop body
LE: loop exit
PB: predicated region body
PF: predicated region fallthrough
CT: control target
= control target key end

     0   :  { %s2182_s24 = smov 0   ;;  %s2443_s0 = inlined_call_operand.vmem [shape: bf16[64,58], index: 0, kind: input, shape index: {}]   ;;  %s2444_s1 = inlined_call_operand.vmem [shape: bf16[58,128], index: 1, kind: input, shape index: {}]   ;;  %s2445_s2 = inlined_call_operand.vmem [shape: f32[1,128], index: 2, kind: input, shape index: {}]   ;;  %s2446_s3 = inlined_call_operand.vmem [shape: bf16[7,128,128], index: 3, kind: input, shape index: {}]   ;;  %s2447_s4 = inlined_call_operand.vmem [shape: f32[7,1,128], index: 4, kind: input, shape index: {}]   ;;  %s2448_s5 = inlined_call_operand.vmem [shape: bf16[128,4], index: 5, kind: input, shape index: {}]   ;;  %s2449_s6 = inlined_call_operand.vmem [shape: f32[1,4], index: 6, kind: input, shape index: {}]   ;;  %s2450_s7 = inlined_call_operand.vmem [shape: bf16[64,4], index: 7, kind: output, shape index: {}]  }
   0x1 LB: > { %s1559_s25 = sadd.s32 4294967295, %s2140_s24   ;;  %p1563_p0 = scmp.ge.s32.totalorder %s2140_s24, 1  ;;  %s2140_s24 = sphi %s2182_s24, %s17_s24  }
   0x2   : > { %p238_p1 = scmp.lt.s32.totalorder %s2140_s24, 3 }
   0x4   : > { %p239_p2 = pnand %p1563_p0, %p238_p1 }
   0x5   : > { %v2032_v0 = vld [vmem:[%s2444_s1] sm:$0xff] (!%p239_p2)   ;;  %v2033_v1 = vld [vmem:[%s2444_s1 + $0x8] sm:$0xff] (!%p239_p2)   ;;  %s1564_s30 = sshll.u32 (!%p239_p2), %s1559_s25, 2  ;;  %v2034_v2 = vld [vmem:[%s2444_s1 + $0x10] sm:$0xff] (!%p239_p2)   ;;  %vm335_vm0 = vcmask (!%p239_p2), 474112   ;;  %vm342_vm1 = vcmask (!%p239_p2), 1044480  }
   0x6   : > { %242 = sbr.rel (%p239_p2) target bundleno = 2081 (0x821), region = 48  ;;  %1851 = vmatprep.subr.bf16.mxu0 (!%p239_p2), %v2032_v0  ;;  %p271_p3 = scmp.lt.s32.totalorder (!%p239_p2), %s1564_s30, 7  ;;  %v2038_v3 = vld [vmem:[%s2446_s3] sm:$0xff] (!%p239_p2)   ;;  %v2035_v4 = vld [vmem:[%s2444_s1 + $0x18] sm:$0x1f] (!%p239_p2)   ;;  %v2039_v5 = vld [vmem:[%s2446_s3 + $0x8] sm:$0xff] (!%p239_p2)  }
   0x7   : > { %1852 = vmatpush3.bf16.msra.mxu0 (!%p239_p2), %v2032_v0  ;;  %1863 = vmatprep.subr.bf16.mxu1 (!%p239_p2), %v2038_v3  ;;  %v2040_v7 = vld [vmem:[%s2446_s3 + $0x10] sm:$0xff] (!%p239_p2)   ;;  %v344_v8 = vsel (!%p239_p2), %vm342_vm1, %v2035_v4, 0  ;;  %v2041_v10 = vld [vmem:[%s2446_s3 + $0x18] sm:$0xff] (!%p239_p2)   ;;  %v2042_v11 = vld [vmem:[%s2446_s3 + $0x20] sm:$0xff] (!%p239_p2)   ;;  %vm1498_vm3 = vcmask (!%p239_p2), 27648  }
   0x8   : > { %1853 = vmatprep.subr.bf16.mxu0 (!%p239_p2), %v2033_v1  ;;  %1864 = vmatpush3.bf16.msra.mxu1 (!%p239_p2), %v2038_v3  ;;  %v2043_v12 = vld [vmem:[%s2446_s3 + $0x28] sm:$0xff] (!%p239_p2)   ;;  %v2044_v13 = vld [vmem:[%s2446_s3 + $0x30] sm:$0xff] (!%p239_p2)   ;;  %v2045_v14 = vld [vmem:[%s2446_s3 + $0x38] sm:$0xff] (!%p239_p2)  }
   0x9   : > { %1865 = vmatprep.subr.bf16.mxu1 (!%p239_p2), %v2039_v5  ;;  %v2046_v15 = vld [vmem:[%s2446_s3 + $0x40] sm:$0xff] (!%p239_p2)   ;;  %v2047_v16 = vld [vmem:[%s2446_s3 + $0x48] sm:$0xff] (!%p239_p2)   ;;  %v2048_v17 = vld [vmem:[%s2446_s3 + $0x50] sm:$0xff] (!%p239_p2)  }
   0xa   : > { %v2049_v18 = vld [vmem:[%s2446_s3 + $0x58] sm:$0xff] (!%p239_p2)   ;;  %v2050_v19 = vld [vmem:[%s2446_s3 + $0x60] sm:$0xff] (!%p239_p2)   ;;  %v2051_v20 = vld [vmem:[%s2446_s3 + $0x68] sm:$0xff] (!%p239_p2)  }
   0xb   : > { %1854 = vmatpush3.bf16.msra.mxu0 (!%p239_p2), %v2033_v1  ;;  %v1568_v21 = vld [vmem:[%s2445_s2] ss:$0 sm:$0xff] (!%p239_p2)  ;;  %v2052_v36 = vld [vmem:[%s2446_s3 + $0x70] sm:$0xff] (!%p239_p2)   ;;  %v2053_v37 = vld [vmem:[%s2446_s3 + $0x78] sm:$0xff] (!%p239_p2)  }
   0xc   : > { %1855 = vmatprep.subr.bf16.mxu0 (!%p239_p2), %v2034_v2  ;;  %1866 = vmatpush3.bf16.msra.mxu1 (!%p239_p2), %v2039_v5  ;;  %v2054_v38 = vld [vmem:[%s2446_s3 + $0x80] sm:$0xff] (!%p239_p2)   ;;  %v2055_v39 = vld [vmem:[%s2446_s3 + $0x88] sm:$0xff] (!%p239_p2)   ;;  %v2056_v40 = vld [vmem:[%s2446_s3 + $0x90] sm:$0xff] (!%p239_p2)  }
   0xd   : > { %s2452_s30 = smov (!%p271_p3, %s1564_s30), 7  ;;  %1867 = vmatprep.subr.bf16.mxu1 %v2040_v7  ;;  %v2057_v41 = vld [vmem:[%s2446_s3 + $0x98] sm:$0xff]   ;;  %v2058_v42 = vld [vmem:[%s2446_s3 + $0xa0] sm:$0xff]   ;;  %v2059_v43 = vld [vmem:[%s2446_s3 + $0xa8] sm:$0xff]  }
   0xe   : > { %s1565_s14 = sshll.u32 %s2452_s30, 2  ;;  %v1577_v44 = vld [vmem:[%s2447_s4] ss:$0 sm:$0xff]  ;;  %v2060_v59 = vld [vmem:[%s2446_s3 + $0xb0] sm:$0xff]   ;;  %v2061_v60 = vld [vmem:[%s2446_s3 + $0xb8] sm:$0xff]  }
   0xf   : > { %s274_s19 = scalar_lea.vmem %s2443_s0, %s1565_s14  ;;  %1856 = vmatpush3.bf16.msra.mxu0 %v2034_v2  ;;  %v2062_v61 = vld [vmem:[%s2446_s3 + $0xc0] sm:$0xff]   ;;  %v2063_v62 = vld [vmem:[%s2446_s3 + $0xc8] sm:$0xff]   ;;  %v2064_v63 = vld [vmem:[%s2446_s3 + $0xd0] sm:$0xff]   ;;  %s280_s25 = scalar_lea.vmem %s2450_s7, %s1565_s14 }
  0x10   : > { %v2036_v6 = vld [vmem:[%s274_s19] sm:$0xff]   ;;  %2023 = vmatprep.subr.msk.bf16.mxu0 %vm342_vm1, %v2035_v4  ;;  %v2037_v9 = vld [vmem:[%s274_s19 + $0x8] sm:$0xff]   ;;  %1868 = vmatpush3.bf16.msra.mxu1 %v2040_v7  ;;  %v2065_v0 = vld [vmem:[%s2446_s3 + $0xd8] sm:$0xff]  }
  0x11   : > { %1859 = vmatprep.mubr.msk.bf16.mxu0 %vm335_vm0, %v2036_v6  ;;  %1869 = vmatprep.subr.bf16.mxu1 %v2041_v10  ;;  %v2066_v1 = vld [vmem:[%s2446_s3 + $0xe0] sm:$0xff]   ;;  %v2067_v2 = vld [vmem:[%s2446_s3 + $0xe8] sm:$0xff]  }
  0x12   : > { %v1603_v3 = vld [vmem:[%s2447_s4 + $0x1] ss:$0 sm:$0xff] }
  0x13   : > { %1858 = vmatpush3.bf16.msra.mxu0 %v344_v8 }
  0x14   : > { %1870 = vmatpush3.bf16.msra.mxu1 %v2041_v10  ;;  %1883 = vmatprep.subr.bf16.mxu0 %v2046_v15 }
  0x15   : > { %1871 = vmatprep.subr.bf16.mxu1 %v2042_v11 }
  0x16   : > { %1860 = vmatmul.mubr.msk.bf16.vlgmr.msra.gmra.mrb[0].mxu0 %vm335_vm0, %v2037_v9 }
  0x17   : > { %1884 = vmatpush3.bf16.msra.mxu0 %v2046_v15 }
  0x18   : > { %1872 = vmatpush3.bf16.msra.mxu1 %v2042_v11  ;;  %1885 = vmatprep.subr.bf16.mxu0 %v2047_v16 }
  0x19   : > { %1873 = vmatprep.subr.bf16.mxu1 %v2043_v12 }
  0x1b   : > { %1886 = vmatpush3.bf16.msra.mxu0 %v2047_v16 }
  0x1c   : > { %1874 = vmatpush3.bf16.msra.mxu1 %v2043_v12  ;;  %1887 = vmatprep.subr.bf16.mxu0 %v2048_v17 }
  0x1d   : > { %1875 = vmatprep.subr.bf16.mxu1 %v2044_v13 }
  0x1f   : > { %1888 = vmatpush3.bf16.msra.mxu0 %v2048_v17 }
  0x20   : > { %1876 = vmatpush3.bf16.msra.mxu1 %v2044_v13  ;;  %1889 = vmatprep.subr.bf16.mxu0 %v2049_v18 }
  0x21   : > { %1877 = vmatprep.subr.bf16.mxu1 %v2045_v14 }
  0x23   : > { %1890 = vmatpush3.bf16.msra.mxu0 %v2049_v18  ;;  %v2068_v18 = vld [vmem:[%s2446_s3 + $0xf0] sm:$0xff]  }
  0x24   : > { %1878 = vmatpush3.bf16.msra.mxu1 %v2045_v14  ;;  %1891 = vmatprep.subr.bf16.mxu0 %v2050_v19 }
  0x25   : > { %1903 = vmatprep.subr.bf16.mxu1 %v2054_v38 }
  0x27   : > { %1892 = vmatpush3.bf16.msra.mxu0 %v2050_v19  ;;  %v2069_v19 = vld [vmem:[%s2446_s3 + $0xf8] sm:$0xff]  }
  0x28   : > { %1893 = vmatprep.subr.bf16.mxu0 %v2051_v20 }
  0x2b   : > { %1894 = vmatpush3.bf16.msra.mxu0 %v2051_v20  ;;  %v2070_v20 = vld [vmem:[%s2446_s3 + $0x100] sm:$0xff]  }
  0x2c   : > { %1895 = vmatprep.subr.bf16.mxu0 %v2052_v36 }
  0x2f   : > { %1896 = vmatpush3.bf16.msra.mxu0 %v2052_v36 }
  0x30   : > { %1897 = vmatprep.subr.bf16.mxu0 %v2053_v37 }
  0x33   : > { %1898 = vmatpush3.bf16.msra.mxu0 %v2053_v37 }
  0x34   : > { %1923 = vmatprep.subr.bf16.mxu0 %v2062_v61 }
  0xe9   : > { %v1861_v22 = vpop.f32.mrb[0].mxu0 }
  0xea   : > { %v389_v23 = vadd.f32 %v1861_v22, %v1568_v21  ;;  %v380_v24 = vpop.f32.mrb[1].mxu0  ;;  %v2072_v22 = vld [vmem:[%s2446_s3 + $0x110] sm:$0xff]  }
  0xeb   : > { %v381_v25 = vadd.f32 %v1568_v21, %v380_v24  ;;  %v1862_v26 = vpop.f32.mrb[2].mxu0  ;;  %v2074_v24 = vld [vmem:[%s2446_s3 + $0x120] sm:$0xff]  }
  0xec   : > { %v392_v27 = vadd.f32 %v1862_v26, %v1568_v21  ;;  %v383_v28 = vpop.f32.mrb[3].mxu0  ;;  %v397_v30 = vmax.f32 %v389_v23, 0.0  ;;  %v2073_v23 = vld [vmem:[%s2446_s3 + $0x118] sm:$0xff]   ;;  %v1629_v26 = vld [vmem:[%s2447_s4 + $0x2] ss:$0 sm:$0xff] }
  0xed   : > { %v384_v29 = vadd.f32 %v1568_v21, %v383_v28  ;;  %v395_v32 = vmax.f32 %v381_v25, 0.0  ;;  %v2071_v21 = vld [vmem:[%s2446_s3 + $0x108] sm:$0xff]  }
  0xee   : > { %v398_v31 = vmax.f32 %v392_v27, 0.0  ;;  %v2075_v25 = vld [vmem:[%s2446_s3 + $0x128] sm:$0xff]  }
  0xef   : > { %v396_v33 = vmax.f32 %v384_v29, 0.0 }
  0xf0   : > { %v400_v34 = vpack.c.bf16 %v398_v31, %v397_v30 }
  0xf1   : > { %v399_v35 = vpack.c.bf16 %v396_v33, %v395_v32 }
  0xf3   : > { %1879 = vmatprep.mubr.bf16.mxu1 %v399_v35 }
  0xf4   : > { %1880 = vmatmul.mubr.bf16.vlgmr.msra.gmra.mrb[0].mxu1 %v400_v34 }
  0xf5   : > { %1904 = vmatpush3.bf16.msra.mxu1 %v2054_v38 }
  0xf6   : > { %1905 = vmatprep.subr.bf16.mxu1 %v2055_v39 }
  0xf9   : > { %1906 = vmatpush3.bf16.msra.mxu1 %v2055_v39 }
  0xfa   : > { %1907 = vmatprep.subr.bf16.mxu1 %v2056_v40 }
  0xfd   : > { %1908 = vmatpush3.bf16.msra.mxu1 %v2056_v40 }
  0xfe   : > { %1909 = vmatprep.subr.bf16.mxu1 %v2057_v41 }
 0x101   : > { %1910 = vmatpush3.bf16.msra.mxu1 %v2057_v41  ;;  %v2076_v41 = vld [vmem:[%s2446_s3 + $0x130] sm:$0xff]  }
 0x102   : > { %1911 = vmatprep.subr.bf16.mxu1 %v2058_v42 }
 0x105   : > { %1912 = vmatpush3.bf16.msra.mxu1 %v2058_v42  ;;  %v2077_v42 = vld [vmem:[%s2446_s3 + $0x138] sm:$0xff]  }
 0x106   : > { %1913 = vmatprep.subr.bf16.mxu1 %v2059_v43 }
 0x109   : > { %1914 = vmatpush3.bf16.msra.mxu1 %v2059_v43  ;;  %v2078_v43 = vld [vmem:[%s2446_s3 + $0x140] sm:$0xff]  }
 0x10a   : > { %1915 = vmatprep.subr.bf16.mxu1 %v2060_v59 }
 0x10d   : > { %1916 = vmatpush3.bf16.msra.mxu1 %v2060_v59 }
 0x10e   : > { %1917 = vmatprep.subr.bf16.mxu1 %v2061_v60 }
 0x111   : > { %1918 = vmatpush3.bf16.msra.mxu1 %v2061_v60 }
 0x112   : > { %1943 = vmatprep.subr.bf16.mxu1 %v2070_v20 }
 0x1c7   : > { %v1881_v45 = vpop.f32.mrb[0].mxu1 }
 0x1c8   : > { %v515_v46 = vadd.f32 %v1881_v45, %v1577_v44  ;;  %v506_v47 = vpop.f32.mrb[1].mxu1  ;;  %v2080_v45 = vld [vmem:[%s2446_s3 + $0x150] sm:$0xff]  }
 0x1c9   : > { %v507_v48 = vadd.f32 %v1577_v44, %v506_v47  ;;  %v1882_v49 = vpop.f32.mrb[2].mxu1  ;;  %v2082_v47 = vld [vmem:[%s2446_s3 + $0x160] sm:$0xff]  }
 0x1ca   : > { %v518_v50 = vadd.f32 %v1882_v49, %v1577_v44  ;;  %v509_v51 = vpop.f32.mrb[3].mxu1  ;;  %v523_v53 = vmax.f32 %v515_v46, 0.0  ;;  %v2081_v46 = vld [vmem:[%s2446_s3 + $0x158] sm:$0xff]   ;;  %v1655_v49 = vld [vmem:[%s2447_s4 + $0x3] ss:$0 sm:$0xff] }
 0x1cb   : > { %v510_v52 = vadd.f32 %v1577_v44, %v509_v51  ;;  %v521_v55 = vmax.f32 %v507_v48, 0.0  ;;  %v2079_v44 = vld [vmem:[%s2446_s3 + $0x148] sm:$0xff]  }
 0x1cc   : > { %v524_v54 = vmax.f32 %v518_v50, 0.0  ;;  %v2083_v48 = vld [vmem:[%s2446_s3 + $0x168] sm:$0xff]  }
 0x1cd   : > { %v522_v56 = vmax.f32 %v510_v52, 0.0 }
 0x1ce   : > { %v526_v57 = vpack.c.bf16 %v524_v54, %v523_v53 }
 0x1cf   : > { %v525_v58 = vpack.c.bf16 %v522_v56, %v521_v55 }
 0x1d1   : > { %1899 = vmatprep.mubr.bf16.mxu0 %v525_v58 }
 0x1d2   : > { %1900 = vmatmul.mubr.bf16.vlgmr.msra.gmra.mrb[4].mxu0 %v526_v57 }
 0x1d3   : > { %1924 = vmatpush3.bf16.msra.mxu0 %v2062_v61 }
 0x1d4   : > { %1925 = vmatprep.subr.bf16.mxu0 %v2063_v62 }
 0x1d7   : > { %1926 = vmatpush3.bf16.msra.mxu0 %v2063_v62 }
 0x1d8   : > { %1927 = vmatprep.subr.bf16.mxu0 %v2064_v63 }
 0x1db   : > { %1928 = vmatpush3.bf16.msra.mxu0 %v2064_v63 }
 0x1dc   : > { %1929 = vmatprep.subr.bf16.mxu0 %v2065_v0 }
 0x1df   : > { %1930 = vmatpush3.bf16.msra.mxu0 %v2065_v0  ;;  %v2084_v0 = vld [vmem:[%s2446_s3 + $0x170] sm:$0xff]  }
 0x1e0   : > { %1931 = vmatprep.subr.bf16.mxu0 %v2066_v1 }
 0x1e3   : > { %1932 = vmatpush3.bf16.msra.mxu0 %v2066_v1  ;;  %v2085_v1 = vld [vmem:[%s2446_s3 + $0x178] sm:$0xff]  }
 0x1e4   : > { %1933 = vmatprep.subr.bf16.mxu0 %v2067_v2 }
 0x1e7   : > { %1934 = vmatpush3.bf16.msra.mxu0 %v2067_v2  ;;  %v2086_v2 = vld [vmem:[%s2446_s3 + $0x180] sm:$0xff]  }
 0x1e8   : > { %1935 = vmatprep.subr.bf16.mxu0 %v2068_v18 }
 0x1eb   : > { %1936 = vmatpush3.bf16.msra.mxu0 %v2068_v18 }
 0x1ec   : > { %1937 = vmatprep.subr.bf16.mxu0 %v2069_v19 }
 0x1ef   : > { %1938 = vmatpush3.bf16.msra.mxu0 %v2069_v19 }
 0x1f0   : > { %1963 = vmatprep.subr.bf16.mxu0 %v2078_v43 }
 0x2a5   : > { %v1901_v4 = vpop.f32.mrb[4].mxu0 }
 0x2a6   : > { %v643_v5 = vadd.f32 %v1901_v4, %v1603_v3  ;;  %v634_v6 = vpop.f32.mrb[5].mxu0  ;;  %v2088_v4 = vld [vmem:[%s2446_s3 + $0x190] sm:$0xff]  }
 0x2a7   : > { %v635_v7 = vadd.f32 %v1603_v3, %v634_v6  ;;  %v1902_v8 = vpop.f32.mrb[6].mxu0  ;;  %v2090_v6 = vld [vmem:[%s2446_s3 + $0x1a0] sm:$0xff]  }
 0x2a8   : > { %v646_v9 = vadd.f32 %v1902_v8, %v1603_v3  ;;  %v637_v10 = vpop.f32.mrb[7].mxu0  ;;  %v651_v12 = vmax.f32 %v643_v5, 0.0  ;;  %v2089_v5 = vld [vmem:[%s2446_s3 + $0x198] sm:$0xff]   ;;  %v1681_v8 = vld [vmem:[%s2447_s4 + $0x4] ss:$0 sm:$0xff] }
 0x2a9   : > { %v638_v11 = vadd.f32 %v1603_v3, %v637_v10  ;;  %v649_v14 = vmax.f32 %v635_v7, 0.0  ;;  %v2087_v3 = vld [vmem:[%s2446_s3 + $0x188] sm:$0xff]  }
 0x2aa   : > { %v652_v13 = vmax.f32 %v646_v9, 0.0  ;;  %v2091_v7 = vld [vmem:[%s2446_s3 + $0x1a8] sm:$0xff]  }
 0x2ab   : > { %v650_v15 = vmax.f32 %v638_v11, 0.0 }
 0x2ac   : > { %v654_v16 = vpack.c.bf16 %v652_v13, %v651_v12 }
 0x2ad   : > { %v653_v17 = vpack.c.bf16 %v650_v15, %v649_v14 }
 0x2af   : > { %1919 = vmatprep.mubr.bf16.mxu1 %v653_v17 }
 0x2b0   : > { %1920 = vmatmul.mubr.bf16.vlgmr.msra.gmra.mrb[4].mxu1 %v654_v16 }
 0x2b1   : > { %1944 = vmatpush3.bf16.msra.mxu1 %v2070_v20 }
 0x2b2   : > { %1945 = vmatprep.subr.bf16.mxu1 %v2071_v21 }
 0x2b5   : > { %1946 = vmatpush3.bf16.msra.mxu1 %v2071_v21 }
 0x2b6   : > { %1947 = vmatprep.subr.bf16.mxu1 %v2072_v22 }
 0x2b9   : > { %1948 = vmatpush3.bf16.msra.mxu1 %v2072_v22 }
 0x2ba   : > { %1949 = vmatprep.subr.bf16.mxu1 %v2073_v23 }
 0x2bd   : > { %1950 = vmatpush3.bf16.msra.mxu1 %v2073_v23  ;;  %v2092_v23 = vld [vmem:[%s2446_s3 + $0x1b0] sm:$0xff]  }
 0x2be   : > { %1951 = vmatprep.subr.bf16.mxu1 %v2074_v24 }
 0x2c1   : > { %1952 = vmatpush3.bf16.msra.mxu1 %v2074_v24  ;;  %v2093_v24 = vld [vmem:[%s2446_s3 + $0x1b8] sm:$0xff]  }
 0x2c2   : > { %1953 = vmatprep.subr.bf16.mxu1 %v2075_v25 }
 0x2c5   : > { %1954 = vmatpush3.bf16.msra.mxu1 %v2075_v25  ;;  %v2094_v25 = vld [vmem:[%s2448_s5] sm:$0xff]  }
 0x2c6   : > { %1955 = vmatprep.subr.bf16.mxu1 %v2076_v41 }
 0x2c9   : > { %1956 = vmatpush3.bf16.msra.mxu1 %v2076_v41 }
 0x2ca   : > { %1957 = vmatprep.subr.bf16.mxu1 %v2077_v42 }
 0x2cd   : > { %1958 = vmatpush3.bf16.msra.mxu1 %v2077_v42  ;;  %v2096_v42 = vld [vmem:[%s2448_s5 + $0x10] sm:$0xff]  }
 0x2ce   : > { %1983 = vmatprep.subr.bf16.mxu1 %v2086_v2 }
 0x383   : > { %v1921_v27 = vpop.f32.mrb[4].mxu1 }
 0x384   : > { %v771_v28 = vadd.f32 %v1921_v27, %v1629_v26  ;;  %v762_v29 = vpop.f32.mrb[5].mxu1  ;;  %v1707_v27 = vld [vmem:[%s2447_s4 + $0x5] ss:$0 sm:$0xff] }
 0x385   : > { %v763_v30 = vadd.f32 %v1629_v26, %v762_v29  ;;  %v1922_v31 = vpop.f32.mrb[6].mxu1 }
 0x386   : > { %v774_v32 = vadd.f32 %v1922_v31, %v1629_v26  ;;  %v765_v33 = vpop.f32.mrb[7].mxu1  ;;  %v779_v35 = vmax.f32 %v771_v28, 0.0 }
 0x387   : > { %v766_v34 = vadd.f32 %v1629_v26, %v765_v33  ;;  %v777_v37 = vmax.f32 %v763_v30, 0.0  ;;  %v2095_v26 = vld [vmem:[%s2448_s5 + $0x8] sm:$0xff]  }
 0x388   : > { %v780_v36 = vmax.f32 %v774_v32, 0.0 }
 0x389   : > { %v778_v38 = vmax.f32 %v766_v34, 0.0 }
 0x38a   : > { %v782_v39 = vpack.c.bf16 %v780_v36, %v779_v35 }
 0x38b   : > { %v781_v40 = vpack.c.bf16 %v778_v38, %v777_v37 }
 0x38d   : > { %1939 = vmatprep.mubr.bf16.mxu0 %v781_v40 }
 0x38e   : > { %1940 = vmatmul.mubr.bf16.vlgmr.msra.gmra.mrb[8].mxu0 %v782_v39 }
 0x38f   : > { %1964 = vmatpush3.bf16.msra.mxu0 %v2078_v43  ;;  %v2097_v43 = vld [vmem:[%s2448_s5 + $0x18] sm:$0xff]  }
 0x390   : > { %1965 = vmatprep.subr.bf16.mxu0 %v2079_v44 }
 0x393   : > { %1966 = vmatpush3.bf16.msra.mxu0 %v2079_v44  ;;  %v2098_v44 = vld [vmem:[%s2448_s5 + $0x20] sm:$0xff]  }
 0x394   : > { %1967 = vmatprep.subr.bf16.mxu0 %v2080_v45 }
 0x397   : > { %1968 = vmatpush3.bf16.msra.mxu0 %v2080_v45  ;;  %v2099_v45 = vld [vmem:[%s2448_s5 + $0x28] sm:$0xff]  }
 0x398   : > { %1969 = vmatprep.subr.bf16.mxu0 %v2081_v46 }
 0x39b   : > { %1970 = vmatpush3.bf16.msra.mxu0 %v2081_v46  ;;  %v2100_v46 = vld [vmem:[%s2448_s5 + $0x30] sm:$0xff]  }
 0x39c   : > { %1971 = vmatprep.subr.bf16.mxu0 %v2082_v47 }
 0x39f   : > { %1972 = vmatpush3.bf16.msra.mxu0 %v2082_v47  ;;  %v2101_v47 = vld [vmem:[%s2448_s5 + $0x38] sm:$0xff]  }
 0x3a0   : > { %1973 = vmatprep.subr.bf16.mxu0 %v2083_v48 }
 0x3a3   : > { %1974 = vmatpush3.bf16.msra.mxu0 %v2083_v48  ;;  %v1733_v48 = vld [vmem:[%s2447_s4 + $0x6] ss:$0 sm:$0xff] }
 0x3a4   : > { %1975 = vmatprep.subr.bf16.mxu0 %v2084_v0 }
 0x3a7   : > { %1976 = vmatpush3.bf16.msra.mxu0 %v2084_v0 }
 0x3a8   : > { %1977 = vmatprep.subr.bf16.mxu0 %v2085_v1 }
 0x3ab   : > { %1978 = vmatpush3.bf16.msra.mxu0 %v2085_v1 }
 0x3ac   : > { %2003 = vmatprep.subr.bf16.mxu0 %v2094_v25 }
 0x461   : > { %v1941_v50 = vpop.f32.mrb[8].mxu0 }
 0x462   : > { %v899_v51 = vadd.f32 %v1941_v50, %v1655_v49  ;;  %v890_v52 = vpop.f32.mrb[9].mxu0 }
 0x463   : > { %v891_v53 = vadd.f32 %v1655_v49, %v890_v52  ;;  %v1942_v54 = vpop.f32.mrb[10].mxu0 }
 0x464   : > { %v902_v55 = vadd.f32 %v1942_v54, %v1655_v49  ;;  %v893_v56 = vpop.f32.mrb[11].mxu0  ;;  %v907_v58 = vmax.f32 %v899_v51, 0.0 }
 0x465   : > { %v894_v57 = vadd.f32 %v1655_v49, %v893_v56  ;;  %v905_v60 = vmax.f32 %v891_v53, 0.0 }
 0x466   : > { %v908_v59 = vmax.f32 %v902_v55, 0.0 }
 0x467   : > { %v906_v61 = vmax.f32 %v894_v57, 0.0 }
 0x468   : > { %v910_v62 = vpack.c.bf16 %v908_v59, %v907_v58 }
 0x469   : > { %v909_v63 = vpack.c.bf16 %v906_v61, %v905_v60 }
 0x46b   : > { %1959 = vmatprep.mubr.bf16.mxu1 %v909_v63 }
 0x46c   : > { %1960 = vmatmul.mubr.bf16.vlgmr.msra.gmra.mrb[8].mxu1 %v910_v62 }
 0x46d   : > { %1984 = vmatpush3.bf16.msra.mxu1 %v2086_v2 }
 0x46e   : > { %1985 = vmatprep.subr.bf16.mxu1 %v2087_v3 }
 0x471   : > { %1986 = vmatpush3.bf16.msra.mxu1 %v2087_v3 }
 0x472   : > { %1987 = vmatprep.subr.bf16.mxu1 %v2088_v4 }
 0x475   : > { %1988 = vmatpush3.bf16.msra.mxu1 %v2088_v4 }
 0x476   : > { %1989 = vmatprep.subr.bf16.mxu1 %v2089_v5 }
 0x479   : > { %1990 = vmatpush3.bf16.msra.mxu1 %v2089_v5 }
 0x47a   : > { %1991 = vmatprep.subr.bf16.mxu1 %v2090_v6 }
 0x47d   : > { %1992 = vmatpush3.bf16.msra.mxu1 %v2090_v6 }
 0x47e   : > { %1993 = vmatprep.subr.bf16.mxu1 %v2091_v7 }
 0x481   : > { %1994 = vmatpush3.bf16.msra.mxu1 %v2091_v7 }
 0x482   : > { %1995 = vmatprep.subr.bf16.mxu1 %v2092_v23 }
 0x485   : > { %1996 = vmatpush3.bf16.msra.mxu1 %v2092_v23 }
 0x486   : > { %1997 = vmatprep.subr.bf16.mxu1 %v2093_v24 }
 0x489   : > { %1998 = vmatpush3.bf16.msra.mxu1 %v2093_v24 }
 0x53f   : > { %v1961_v9 = vpop.f32.mrb[8].mxu1 }
 0x540   : > { %v1027_v10 = vadd.f32 %v1961_v9, %v1681_v8  ;;  %v1018_v11 = vpop.f32.mrb[9].mxu1 }
 0x541   : > { %v1019_v12 = vadd.f32 %v1681_v8, %v1018_v11  ;;  %v1962_v13 = vpop.f32.mrb[10].mxu1  ;;  %v1742_v11 = vld [vmem:[%s2449_s6] ss:$0 sm:$0xff] }
 0x542   : > { %v1030_v14 = vadd.f32 %v1962_v13, %v1681_v8  ;;  %v1021_v15 = vpop.f32.mrb[11].mxu1  ;;  %v1035_v17 = vmax.f32 %v1027_v10, 0.0 }
 0x543   : > { %v1022_v16 = vadd.f32 %v1681_v8, %v1021_v15  ;;  %v1033_v19 = vmax.f32 %v1019_v12, 0.0 }
 0x544   : > { %v1036_v18 = vmax.f32 %v1030_v14, 0.0 }
 0x545   : > { %v1034_v20 = vmax.f32 %v1022_v16, 0.0 }
 0x546   : > { %v1038_v21 = vpack.c.bf16 %v1036_v18, %v1035_v17 }
 0x547   : > { %v1037_v22 = vpack.c.bf16 %v1034_v20, %v1033_v19 }
 0x549   : > { %1979 = vmatprep.mubr.bf16.mxu0 %v1037_v22 }
 0x54a   : > { %1980 = vmatmul.mubr.bf16.vlgmr.msra.gmra.mrb[12].mxu0 %v1038_v21 }
 0x54b   : > { %2004 = vmatpush3.bf16.msra.mxu0 %v2094_v25 }
 0x54c   : > { %2005 = vmatprep.subr.bf16.mxu0 %v2095_v26 }
 0x54f   : > { %2006 = vmatpush3.bf16.msra.mxu0 %v2095_v26 }
 0x550   : > { %2007 = vmatprep.subr.bf16.mxu0 %v2096_v42 }
 0x553   : > { %2008 = vmatpush3.bf16.msra.mxu0 %v2096_v42 }
 0x554   : > { %2009 = vmatprep.subr.bf16.mxu0 %v2097_v43 }
 0x557   : > { %2010 = vmatpush3.bf16.msra.mxu0 %v2097_v43 }
 0x558   : > { %2011 = vmatprep.subr.bf16.mxu0 %v2098_v44 }
 0x55b   : > { %2012 = vmatpush3.bf16.msra.mxu0 %v2098_v44 }
 0x55c   : > { %2013 = vmatprep.subr.bf16.mxu0 %v2099_v45 }
 0x55f   : > { %2014 = vmatpush3.bf16.msra.mxu0 %v2099_v45 }
 0x560   : > { %2015 = vmatprep.subr.bf16.mxu0 %v2100_v46 }
 0x563   : > { %2016 = vmatpush3.bf16.msra.mxu0 %v2100_v46 }
 0x564   : > { %2017 = vmatprep.subr.bf16.mxu0 %v2101_v47 }
 0x567   : > { %2018 = vmatpush3.bf16.msra.mxu0 %v2101_v47 }
 0x61d   : > { %v1981_v28 = vpop.f32.mrb[12].mxu0 }
 0x61e   : > { %v1155_v29 = vadd.f32 %v1981_v28, %v1707_v27  ;;  %v1146_v30 = vpop.f32.mrb[13].mxu0 }
 0x61f   : > { %v1147_v31 = vadd.f32 %v1707_v27, %v1146_v30  ;;  %v1982_v32 = vpop.f32.mrb[14].mxu0 }
 0x620   : > { %v1158_v33 = vadd.f32 %v1982_v32, %v1707_v27  ;;  %v1149_v34 = vpop.f32.mrb[15].mxu0  ;;  %v1163_v36 = vmax.f32 %v1155_v29, 0.0 }
 0x621   : > { %v1150_v35 = vadd.f32 %v1707_v27, %v1149_v34  ;;  %v1161_v38 = vmax.f32 %v1147_v31, 0.0 }
 0x622   : > { %v1164_v37 = vmax.f32 %v1158_v33, 0.0 }
 0x623   : > { %v1162_v39 = vmax.f32 %v1150_v35, 0.0 }
 0x624   : > { %v1166_v40 = vpack.c.bf16 %v1164_v37, %v1163_v36 }
 0x625   : > { %v1165_v41 = vpack.c.bf16 %v1162_v39, %v1161_v38 }
 0x627   : > { %1999 = vmatprep.mubr.bf16.mxu1 %v1165_v41 }
 0x628   : > { %2000 = vmatmul.mubr.bf16.vlgmr.msra.gmra.mrb[12].mxu1 %v1166_v40 }
 0x6fb   : > { %v2001_v49 = vpop.f32.mrb[12].mxu1 }
 0x6fc   : > { %v1283_v50 = vadd.f32 %v2001_v49, %v1733_v48  ;;  %v1274_v51 = vpop.f32.mrb[13].mxu1 }
 0x6fd   : > { %v1275_v52 = vadd.f32 %v1733_v48, %v1274_v51  ;;  %v2002_v53 = vpop.f32.mrb[14].mxu1 }
 0x6fe   : > { %v1291_v54 = vmul.f32 0.5, %v1283_v50  ;;  %v1286_v55 = vadd.f32 %v2002_v53, %v1733_v48  ;;  %v1277_v56 = vpop.f32.mrb[15].mxu1 }
 0x6ff   : > { %v1289_v57 = vmul.f32 0.5, %v1275_v52  ;;  %v1278_v58 = vadd.f32 %v1733_v48, %v1277_v56  ;;  %v1443_v52 = vlaneseq }
 0x700   : > { %2102 = vtanh.f32 %v1291_v54  ;;  %v1292_v59 = vmul.f32 0.5, %v1286_v55 }
 0x701   : > { %2104 = vtanh.f32 %v1289_v57  ;;  %v1290_v60 = vmul.f32 0.5, %v1278_v58  ;;  %v1444_v53 = vand.u32 127, %v1443_v52 }
 0x702   : > { %2106 = vtanh.f32 %v1292_v59 }
 0x703   : > { %2108 = vtanh.f32 %v1290_v60  ;;  %vm1477_vm2 = vcmp.lt.s32.totalorder %v1444_v53, 3 }
 0x70a   : > { %v2103_v61 = vpop.eup %2102 }
 0x70b   : > { %v2105_v62 = vpop.eup %2104  ;;  %v1299_v63 = vmul.f32 0.5, %v2103_v61 }
 0x70c   : > { %v2107_v0 = vpop.eup %2106  ;;  %v1297_v1 = vmul.f32 0.5, %v2105_v62 }
 0x70d   : > { %v2109_v2 = vpop.eup %2108  ;;  %v1300_v3 = vmul.f32 0.5, %v2107_v0  ;;  %v1303_v5 = vadd.f32 0.5, %v1299_v63 }
 0x70e   : > { %v1298_v4 = vmul.f32 0.5, %v2109_v2  ;;  %v1301_v7 = vadd.f32 0.5, %v1297_v1 }
 0x70f   : > { %v1304_v6 = vadd.f32 0.5, %v1300_v3 }
 0x710   : > { %v1302_v8 = vadd.f32 0.5, %v1298_v4 }
 0x711   : > { %v1306_v9 = vpack.c.bf16 %v1304_v6, %v1303_v5 }
 0x712   : > { %v1305_v10 = vpack.c.bf16 %v1302_v8, %v1301_v7 }
 0x714   : > { %2019 = vmatprep.mubr.bf16.mxu0 %v1305_v10 }
 0x715   : > { %2020 = vmatmul.mubr.bf16.vlgmr.msra.gmra.mrb[16].mxu0 %v1306_v9 }
 0x7e8   : > { %v2021_v12 = vpop.f32.mrb[16].mxu0 }
 0x7e9   : > { %v1421_v13 = vadd.f32 %v2021_v12, %v1742_v11  ;;  %v1412_v14 = vpop.f32.mrb[17].mxu0 }
 0x7ea   : > { %v1413_v15 = vadd.f32 %v1742_v11, %v1412_v14  ;;  %v2022_v16 = vpop.f32.mrb[18].mxu0 }
 0x7eb   : > { %v1429_v17 = vmul.f32 0.5, %v1421_v13  ;;  %v1424_v18 = vadd.f32 %v2022_v16, %v1742_v11  ;;  %v1415_v19 = vpop.f32.mrb[19].mxu0 }
 0x7ec   : > { %v1427_v20 = vmul.f32 0.5, %v1413_v15  ;;  %v1416_v21 = vadd.f32 %v1742_v11, %v1415_v19 }
 0x7ed   : > { %2110 = vtanh.f32 %v1429_v17  ;;  %v1430_v22 = vmul.f32 0.5, %v1424_v18 }
 0x7ee   : > { %2112 = vtanh.f32 %v1427_v20  ;;  %v1428_v23 = vmul.f32 0.5, %v1416_v21 }
 0x7ef   : > { %2114 = vtanh.f32 %v1430_v22 }
 0x7f0   : > { %2116 = vtanh.f32 %v1428_v23 }
 0x7f7   : > { %v2111_v24 = vpop.eup %2110 }
 0x7f8   : > { %v2113_v25 = vpop.eup %2112  ;;  %v1437_v26 = vmul.f32 0.5, %v2111_v24 }
 0x7f9   : > { %v2115_v27 = vpop.eup %2114  ;;  %v1435_v28 = vmul.f32 0.5, %v2113_v25 }
 0x7fa   : > { %v2117_v29 = vpop.eup %2116  ;;  %v1441_v30 = vadd.f32 0.5, %v1437_v26  ;;  %v1438_v31 = vmul.f32 0.5, %v2115_v27 }
 0x7fb   : > { %v1439_v32 = vadd.f32 0.5, %v1435_v28  ;;  %v1436_v33 = vmul.f32 0.5, %v2117_v29 }
 0x7fc   : > { %v1455_v34 = vadd.f32 -1.0, %v1441_v30  ;;  %v1442_v35 = vadd.f32 0.5, %v1438_v31  ;;  %v1447_v56 = vmul.f32 1.002, %v1441_v30 }
 0x7fd   : > { %v1453_v36 = vadd.f32 -1.0, %v1439_v32  ;;  %v1440_v37 = vadd.f32 0.5, %v1436_v33  ;;  %v1445_v54 = vmul.f32 1.002, %v1439_v32 }
 0x7fe   : > { %v1461_v38 = vmul.f32 1.442695, %v1455_v34  ;;  %v1456_v40 = vadd.f32 -1.0, %v1442_v35  ;;  %v1448_v58 = vmul.f32 1.002, %v1442_v35 }
 0x7ff   : > { %v1457_v39 = vmul.f32 1.442695, %v1453_v36  ;;  %v1454_v41 = vadd.f32 -1.0, %v1440_v37  ;;  %v1446_v59 = vmul.f32 1.002, %v1440_v37 }
 0x800   : > { %2118 = vpow2.f32 %v1461_v38  ;;  %v1463_v42 = vmul.f32 1.442695, %v1456_v40  ;;  %v1751_v61 = vadd.f32 -0.001, %v1445_v54  ;;  %v1753_v1 = vadd.f32 -0.001, %v1447_v56 }
 0x801   : > { %2120 = vpow2.f32 %v1457_v39  ;;  %v1459_v43 = vmul.f32 1.442695, %v1454_v41  ;;  %v1754_v5 = vadd.f32 -0.001, %v1448_v58  ;;  %v1752_v6 = vadd.f32 -0.001, %v1446_v59 }
 0x802   : > { %2122 = vpow2.f32 %v1463_v42 }
 0x803   : > { %2124 = vpow2.f32 %v1459_v43 }
 0x80a   : > { %v2119_v44 = vpop.eup %2118 }
 0x80b   : > { %v2121_v45 = vpop.eup %2120  ;;  %v1467_v46 = vadd.f32 1.0, %v2119_v44 }
 0x80c   : > { %v1465_v47 = vadd.f32 1.0, %v2121_v45  ;;  %v2123_v48 = vpop.eup %2122 }
 0x80d   : > { %2126 = vlog2.f32 %v1467_v46  ;;  %v2125_v49 = vpop.eup %2124  ;;  %v1468_v50 = vadd.f32 1.0, %v2123_v48 }
 0x80e   : > { %2128 = vlog2.f32 %v1465_v47  ;;  %v1466_v51 = vadd.f32 1.0, %v2125_v49 }
 0x80f   : > { %2130 = vlog2.f32 %v1468_v50 }
 0x810   : > { %2132 = vlog2.f32 %v1466_v51 }
 0x817   : > { %v2127_v55 = vpop.eup %2126 }
 0x818   : > { %v2129_v57 = vpop.eup %2128  ;;  %v1474_v60 = vmul.f32 0.6931472, %v2127_v55 }
 0x819   : > { %v1470_v62 = vmul.f32 0.6931472, %v2129_v57  ;;  %v2131_v63 = vpop.eup %2130 }
 0x81a   : > { %v2133_v0 = vpop.eup %2132  ;;  %v1476_v3 = vmul.f32 0.6931472, %v2131_v63  ;;  %v1480_v8 = vsel %vm1477_vm2, %v1753_v1, %v1474_v60 }
 0x81b   : > { %v1478_v2 = vsel %vm1477_vm2, %v1751_v61, %v1470_v62  ;;  %v1472_v7 = vmul.f32 0.6931472, %v2133_v0  ;;  %v1763_v12 = vpack.c.bf16 %v1480_v8, %v1480_v8 }
 0x81c   : > { %v1761_v4 = vpack.c.bf16 %v1478_v2, %v1478_v2  ;;  %v1481_v9 = vsel %vm1477_vm2, %v1754_v5, %v1476_v3 }
 0x81d   : > { %v1479_v10 = vsel %vm1477_vm2, %v1752_v6, %v1472_v7  ;;  %v1764_v13 = vpack.c.bf16 %v1481_v9, %v1481_v9  ;;  %1501 = vst.msk [vmem:[%s280_s25 + $0x8] sm:$0xf] %vm1498_vm3, %v1763_v12 }
 0x81e   : > { %1499 = vst.msk [vmem:[%s280_s25] sm:$0xf] %vm1498_vm3, %v1761_v4  ;;  %v1762_v11 = vpack.c.bf16 %v1479_v10, %v1479_v10 }
 0x81f   : > { %1502 = vst.msk [vmem:[%s280_s25 + $0xc] sm:$0xf] %vm1498_vm3, %v1764_v13 }
 0x820   : > { %1500 = vst.msk [vmem:[%s280_s25 + $0x4] sm:$0xf] %vm1498_vm3, %v1762_v11 }
 0x821 PF: > { %s17_s24 = sadd.s32 1, %s2140_s24  }
 0x822   : > { %p14_p4 = scmp.ge.s32.totalorder %s17_s24, 4  }
 0x824   :  { %16 = sbr.rel (!%p14_p4) target bundleno = 1 (0x1), region = 90 }

</bundles_post_ra>
